<compile_context>
chip_gen: v6e
topology: v6e:2x2x1
jax: 0.10.0
libtpu: 0.0.40
codegen_flags: <defaults>
</compile_context>

<pallas_src>
import functools

import jax
import jax.numpy as jnp
from jax import lax
from jax.experimental import pallas as pl
from jax.experimental.pallas import tpu as pltpu


def _pcnn_kernel(x_ref, musk_ref, w_ref, b_ref, out_ref, *, window, max_pos):
    # x_ref    : (TB, S + 2, C)   bf16 embeddings, seq padded by 1 on each side
    # musk_ref : (TB, S, 1)       int32 PCNN segment ids in {0, 1, 2, 3}
    # w_ref    : (window, C, H)   bf16 conv weights, w_ref[w] == conv_w[:, :, 0, w].T
    # b_ref    : (1, H)           f32 conv bias
    # out_ref  : (TB, 3 * H)      f32 relu(piecewise max pool), segment-major layout
    tb = x_ref.shape[0]
    c = x_ref.shape[2]
    s = musk_ref.shape[1]
    h = b_ref.shape[1]

    x = x_ref[...]                                     # (TB, S+2, C) bf16, single load

    # (1, window) conv == `window` shifted bf16 MXU matmuls with f32 accumulation.
    conv = jnp.dot(x[:, 0:s, :].reshape(tb * s, c), w_ref[0],
                   preferred_element_type=jnp.float32)
    for w in range(1, window):
        conv = conv + jnp.dot(x[:, w:w + s, :].reshape(tb * s, c), w_ref[w],
                              preferred_element_type=jnp.float32)
    conv3 = conv.reshape(tb, s, h)                     # layout-preserving when S % 8 == 0

    musk = musk_ref[...]                               # (TB, S, 1) int32
    bias = b_ref[...]                                  # (1, H) f32

    # Piecewise max pooling + ReLU.  Bias and -max_pos are folded after the pool
    # (both are uniform over S, so max commutes with them).
    segs = []
    for k in range(3):                                 # three PCNN segments
        boost = jnp.where(musk == k + 1, max_pos, 0.0)             # (TB, S, 1)
        pooled = jnp.max(conv3 + boost, axis=1)                    # (TB, H)
        segs.append(jnp.maximum(pooled + bias - max_pos, 0.0))     # ReLU
    out_ref[...] = jnp.concatenate(segs, axis=-1)      # one dense (TB, 3H) store


def pcnn_encoder_forward(inputs, musk, pos1, pos2, params, *,
                         window=3, max_pos=100, batch_block=None):
    """JAX/Pallas equivalent of PCNNEncoder.forward (position=True, eval mode)."""
    word_emb = params["word_emb"]       # (n_word+2, input_size)
    pos1_emb = params["pos1_emb"]       # (n_pos+1, pos_size)
    pos2_emb = params["pos2_emb"]       # (n_pos+1, pos_size)
    conv_w = params["conv_w"]           # (H, C, 1, window)
    conv_b = params["conv_b"]           # (H,)

    B, S = inputs.shape
    H, C = conv_w.shape[0], conv_w.shape[1]

    pad = 1  # the PyTorch module hardcodes Conv2d padding=(0, 1)
    if S + 2 * pad - window + 1 != S:
        raise ValueError("PCNNEncoder's hardcoded padding=(0,1) is only shape-consistent "
                         "with window=3")

    # ---- embedding lookups (wrapper-side gathers), cast to bf16 for the MXU ----
    embedded = jnp.concatenate(
        [jnp.take(word_emb, inputs, axis=0),
         jnp.take(pos1_emb, pos1, axis=0),
         jnp.take(pos2_emb, pos2, axis=0)], axis=-1).astype(jnp.bfloat16)   # (B, S, C)

    # ---- batch block size: multiple of 8, ~512 matmul rows/step, VMEM-capped,
    #      >= 2 grid steps whenever the batch allows it ----
    if batch_block is None:
        tb = max(8, -(-512 // S))
        tb = ((tb + 7) // 8) * 8
        per_b = (2 * (S + 2 * pad) * max(C, 128) * 2     # x block, bf16, double-buffered
                 + 3 * S * H * 4                         # conv + boosted temps (f32)
                 + 2 * 3 * H * 4 + S * 128 * 4)          # out block (2 bufs) + musk
        tb = min(tb, max(8, (24 * 1024 * 1024 // per_b) // 8 * 8))   # v7x 64 MiB budget
        while tb > 8 and -(-B // tb) < 2:
            tb -= 8
    else:
        tb = ((int(batch_block) + 7) // 8) * 8           # keep output stores sublane-dense
    tb = max(8, tb)
    b_pad = -(-B // tb) * tb
    grid = (b_pad // tb,)

    # ---- pad batch up to a multiple of TB and seq by 1 on each side (conv padding) ----
    x_pad = jnp.pad(embedded, ((0, b_pad - B), (pad, pad), (0, 0)))       # (b_pad, S+2, C)
    musk3 = jnp.pad(musk.astype(jnp.int32), ((0, b_pad - B), (0, 0)))[..., None]

    # conv weight (H, C, 1, window) -> (window, C, H) bf16; bias stays f32
    w3 = jnp.transpose(conv_w[:, :, 0, :], (2, 1, 0)).astype(jnp.bfloat16)
    b2 = conv_b.reshape(1, H).astype(jnp.float32)

    kernel = functools.partial(_pcnn_kernel, window=window, max_pos=float(max_pos))

    out = pl.pallas_call(
        kernel,
        out_shape=jax.ShapeDtypeStruct((b_pad, 3 * H), jnp.float32),
        grid_spec=pltpu.PrefetchScalarGridSpec(
            num_scalar_prefetch=0,
            grid=grid,
            in_specs=[
                pl.BlockSpec((tb, S + 2 * pad, C), lambda b: (b, 0, 0)),   # embeddings
                pl.BlockSpec((tb, S, 1), lambda b: (b, 0, 0)),             # musk ids
                pl.BlockSpec((window, C, H), lambda b: (0, 0, 0)),         # weights (resident)
                pl.BlockSpec((1, H), lambda b: (0, 0)),                    # bias (resident)
            ],
            out_specs=pl.BlockSpec((tb, 3 * H), lambda b: (b, 0)),
        ),
        compiler_params=pltpu.CompilerParams(
            dimension_semantics=("parallel",),
            vmem_limit_bytes=32 * 1024 * 1024),
    )(x_pad, musk3, w3, b2)

    # (b_pad, 3H) segment-major -> PyTorch's pooled.view(B, H*3) (h-major) ordering.
    out3 = out[:B].reshape(B, 3, H)
    return jnp.transpose(out3, (0, 2, 1)).reshape(B, H * 3)


def _reference(inputs, musk, pos1, pos2, params, *, window=3, max_pos=100):
    """Pure-JAX reference of PCNNEncoder.forward (eval mode)."""
    e = jnp.concatenate([jnp.take(params["word_emb"], inputs, axis=0),
                         jnp.take(params["pos1_emb"], pos1, axis=0),
                         jnp.take(params["pos2_emb"], pos2, axis=0)], axis=-1)
    B, S, _ = e.shape
    H = params["conv_w"].shape[0]
    epad = jnp.pad(e, ((0, 0), (1, 1), (0, 0)))
    conv = jnp.zeros((B, S, H), jnp.float32)
    for w in range(window):
        conv = conv + jnp.einsum("bsc,hc->bsh", epad[:, w:w + S, :],
                                 params["conv_w"][:, :, 0, w],
                                 precision=lax.Precision.HIGHEST)
    conv = conv + params["conv_b"]
    table = jnp.array([[0., 0., 0.], [1., 0., 0.], [0., 1., 0.], [0., 0., 1.]],
                      jnp.float32)
    onehot = jnp.take(table, musk, axis=0)                           # (B, S, 3)
    boosted = conv[:, :, :, None] + onehot[:, :, None, :] * float(max_pos)
    pooled = jnp.max(boosted, axis=1) - float(max_pos)               # (B, H, 3)
    return jax.nn.relu(pooled.reshape(B, H * 3))


if __name__ == "__main__":
    # Small shapes consistent with the module.
    B = 16           # batch (default heuristic -> TB=8, grid=(2,): pipelined + megacore)
    S = 16           # sentence length (poolsize), multiple of 8
    n_word = 100
    n_pos = 20
    input_size = 32
    pos_size = 8
    hidden_size = 128    # lane-dense output stores (H multiple of 128)
    window = 3
    max_pos = 100
    C = input_size + 2 * pos_size

    root = jax.random.PRNGKey(0)
    k_we, k_p1, k_p2, k_cw, k_in, k_mu, k_q1, k_q2 = jax.random.split(root, 8)

    word_emb = jax.random.normal(k_we, (n_word + 2, input_size), jnp.float32)
    word_emb = word_emb.at[n_word + 1].set(0.0)   # padding_idx row zeroed
    pos1_emb = jax.random.uniform(k_p1, (n_pos + 1, pos_size), jnp.float32, -0.1, 0.1)
    pos2_emb = jax.random.uniform(k_p2, (n_pos + 1, pos_size), jnp.float32, -0.1, 0.1)
    conv_w = jax.random.uniform(k_cw, (hidden_size, C, 1, window), jnp.float32, -0.1, 0.1)
    conv_b = jnp.zeros((hidden_size,), jnp.float32)
    params = {"word_emb": word_emb, "pos1_emb": pos1_emb, "pos2_emb": pos2_emb,
              "conv_w": conv_w, "conv_b": conv_b}

    inputs = jax.random.randint(k_in, (B, S), 0, n_word + 1, jnp.int32)
    musk = jax.random.randint(k_mu, (B, S), 0, 4, jnp.int32)
    pos1 = jax.random.randint(k_q1, (B, S), 0, n_pos, jnp.int32)
    pos2 = jax.random.randint(k_q2, (B, S), 0, n_pos, jnp.int32)

    out = pcnn_encoder_forward(inputs, musk, pos1, pos2, params,
                               window=window, max_pos=max_pos)
    jax.block_until_ready(out)

    assert out.shape == (B, hidden_size * 3)
    ref = _reference(inputs, musk, pos1, pos2, params, window=window, max_pos=max_pos)
    # bf16 matmul operands (f32 accumulation) vs. f32 HIGHEST reference -> 2e-2 tolerance.
    assert jnp.allclose(out, ref, atol=2e-2, rtol=2e-2), \
        float(jnp.max(jnp.abs(out - ref)))
    print("KERNEL_OK")
</pallas_src>

<mosaic_0001>
module attributes {stable_mosaic.version = 11 : i64} {
  func.func @_pcnn_kernel(%arg0: i32, %arg1: memref<8x18x48xbf16, #tpu.memory_space<vmem>>, %arg2: memref<8x16x1xi32, #tpu.memory_space<vmem>>, %arg3: memref<3x48x128xbf16, #tpu.memory_space<vmem>>, %arg4: memref<1x128xf32, #tpu.memory_space<vmem>>, %arg5: memref<8x384xf32, #tpu.memory_space<vmem>>) attributes {dimension_semantics = [#tpu.dimension_semantics<parallel>], iteration_bounds = array<i64: 2>, scalar_prefetch = 0 : i64, scratch_operands = 0 : i64, tpu.core_type = #tpu.core_type<tc>, window_params = [{transform_indices = @transform_0, window_bounds = array<i64: 8, 18, 48>}, {transform_indices = @transform_1, window_bounds = array<i64: 8, 16, 1>}, {pipeline_mode = #tpu.pipeline_mode<synchronous>, transform_indices = @transform_2, window_bounds = array<i64: 3, 48, 128>}, {pipeline_mode = #tpu.pipeline_mode<synchronous>, transform_indices = @transform_3, window_bounds = array<i64: 1, 128>}, {transform_indices = @transform_4, window_bounds = array<i64: 8, 384>}]} {
    %c0 = arith.constant 0 : index
    %c0_0 = arith.constant 0 : index
    %c0_1 = arith.constant 0 : index
    %0 = vector.load %arg1[%c0, %c0_0, %c0_1] : memref<8x18x48xbf16, #tpu.memory_space<vmem>>, vector<8x18x48xbf16>
    %1 = vector.extract_strided_slice %0 {offsets = [0, 0, 0], sizes = [8, 16, 48], strides = [1, 1, 1]} : vector<8x18x48xbf16> to vector<8x16x48xbf16>
    %2 = vector.shape_cast %1 : vector<8x16x48xbf16> to vector<128x48xbf16>
    %c0_2 = arith.constant 0 : index
    %c0_3 = arith.constant 0 : index
    %c0_4 = arith.constant 0 : index
    %3 = vector.load %arg3[%c0_2, %c0_3, %c0_4] : memref<3x48x128xbf16, #tpu.memory_space<vmem>>, vector<1x48x128xbf16>
    %4 = vector.shape_cast %3 : vector<1x48x128xbf16> to vector<48x128xbf16>
    %cst = arith.constant dense<0.000000e+00> : vector<128x128xf32>
    %5 = tpu.matmul %2, %4, %cst {dimension_numbers = #tpu.dot_dimension_numbers<[1], [0], [0], [1], [0, 0, 1, 1], [], []>} : vector<128x48xbf16>, vector<48x128xbf16>, vector<128x128xf32> -> vector<128x128xf32>
    %6 = vector.extract_strided_slice %0 {offsets = [0, 1, 0], sizes = [8, 16, 48], strides = [1, 1, 1]} : vector<8x18x48xbf16> to vector<8x16x48xbf16>
    %7 = vector.shape_cast %6 : vector<8x16x48xbf16> to vector<128x48xbf16>
    %c1 = arith.constant 1 : index
    %c0_5 = arith.constant 0 : index
    %c0_6 = arith.constant 0 : index
    %8 = vector.load %arg3[%c1, %c0_5, %c0_6] : memref<3x48x128xbf16, #tpu.memory_space<vmem>>, vector<1x48x128xbf16>
    %9 = vector.shape_cast %8 : vector<1x48x128xbf16> to vector<48x128xbf16>
    %cst_7 = arith.constant dense<0.000000e+00> : vector<128x128xf32>
    %10 = tpu.matmul %7, %9, %cst_7 {dimension_numbers = #tpu.dot_dimension_numbers<[1], [0], [0], [1], [0, 0, 1, 1], [], []>} : vector<128x48xbf16>, vector<48x128xbf16>, vector<128x128xf32> -> vector<128x128xf32>
    %11 = arith.addf %5, %10 : vector<128x128xf32>
    %12 = vector.extract_strided_slice %0 {offsets = [0, 2, 0], sizes = [8, 16, 48], strides = [1, 1, 1]} : vector<8x18x48xbf16> to vector<8x16x48xbf16>
    %13 = vector.shape_cast %12 : vector<8x16x48xbf16> to vector<128x48xbf16>
    %c2 = arith.constant 2 : index
    %c0_8 = arith.constant 0 : index
    %c0_9 = arith.constant 0 : index
    %14 = vector.load %arg3[%c2, %c0_8, %c0_9] : memref<3x48x128xbf16, #tpu.memory_space<vmem>>, vector<1x48x128xbf16>
    %15 = vector.shape_cast %14 : vector<1x48x128xbf16> to vector<48x128xbf16>
    %cst_10 = arith.constant dense<0.000000e+00> : vector<128x128xf32>
    %16 = tpu.matmul %13, %15, %cst_10 {dimension_numbers = #tpu.dot_dimension_numbers<[1], [0], [0], [1], [0, 0, 1, 1], [], []>} : vector<128x48xbf16>, vector<48x128xbf16>, vector<128x128xf32> -> vector<128x128xf32>
    %17 = arith.addf %11, %16 : vector<128x128xf32>
    %18 = vector.shape_cast %17 : vector<128x128xf32> to vector<8x16x128xf32>
    %c0_11 = arith.constant 0 : index
    %c0_12 = arith.constant 0 : index
    %c0_13 = arith.constant 0 : index
    %19 = vector.load %arg2[%c0_11, %c0_12, %c0_13] : memref<8x16x1xi32, #tpu.memory_space<vmem>>, vector<8x16x1xi32>
    %c0_14 = arith.constant 0 : index
    %c0_15 = arith.constant 0 : index
    %20 = vector.load %arg4[%c0_14, %c0_15] : memref<1x128xf32, #tpu.memory_space<vmem>>, vector<1x128xf32>
    %c1_i32 = arith.constant 1 : i32
    %21 = vector.broadcast %c1_i32 : i32 to vector<8x16x1xi32>
    %22 = arith.cmpi eq, %19, %21 : vector<8x16x1xi32>
    %cst_16 = arith.constant 1.000000e+02 : f32
    %cst_17 = arith.constant 0.000000e+00 : f32
    %23 = vector.broadcast %cst_16 : f32 to vector<8x16x1xf32>
    %24 = vector.broadcast %cst_17 : f32 to vector<8x16x1xf32>
    %25 = arith.select %22, %23, %24 : vector<8x16x1xi1>, vector<8x16x1xf32>
    %26 = vector.broadcast %25 : vector<8x16x1xf32> to vector<8x16x128xf32>
    %27 = arith.addf %18, %26 : vector<8x16x128xf32>
    %cst_18 = arith.constant dense<0xFF800000> : vector<8x128xf32>
    %28 = vector.multi_reduction <maximumf>, %27, %cst_18 [1] : vector<8x16x128xf32> to vector<8x128xf32>
    %29 = vector.broadcast %20 : vector<1x128xf32> to vector<8x128xf32>
    %30 = arith.addf %28, %29 : vector<8x128xf32>
    %cst_19 = arith.constant 1.000000e+02 : f32
    %31 = vector.broadcast %cst_19 : f32 to vector<8x128xf32>
    %32 = arith.subf %30, %31 : vector<8x128xf32>
    %cst_20 = arith.constant 0.000000e+00 : f32
    %33 = vector.broadcast %cst_20 : f32 to vector<8x128xf32>
    %34 = arith.maximumf %32, %33 : vector<8x128xf32>
    %c2_i32 = arith.constant 2 : i32
    %35 = vector.broadcast %c2_i32 : i32 to vector<8x16x1xi32>
    %36 = arith.cmpi eq, %19, %35 : vector<8x16x1xi32>
    %cst_21 = arith.constant 1.000000e+02 : f32
    %cst_22 = arith.constant 0.000000e+00 : f32
    %37 = vector.broadcast %cst_21 : f32 to vector<8x16x1xf32>
    %38 = vector.broadcast %cst_22 : f32 to vector<8x16x1xf32>
    %39 = arith.select %36, %37, %38 : vector<8x16x1xi1>, vector<8x16x1xf32>
    %40 = vector.broadcast %39 : vector<8x16x1xf32> to vector<8x16x128xf32>
    %41 = arith.addf %18, %40 : vector<8x16x128xf32>
    %cst_23 = arith.constant dense<0xFF800000> : vector<8x128xf32>
    %42 = vector.multi_reduction <maximumf>, %41, %cst_23 [1] : vector<8x16x128xf32> to vector<8x128xf32>
    %43 = vector.broadcast %20 : vector<1x128xf32> to vector<8x128xf32>
    %44 = arith.addf %42, %43 : vector<8x128xf32>
    %cst_24 = arith.constant 1.000000e+02 : f32
    %45 = vector.broadcast %cst_24 : f32 to vector<8x128xf32>
    %46 = arith.subf %44, %45 : vector<8x128xf32>
    %cst_25 = arith.constant 0.000000e+00 : f32
    %47 = vector.broadcast %cst_25 : f32 to vector<8x128xf32>
    %48 = arith.maximumf %46, %47 : vector<8x128xf32>
    %c3_i32 = arith.constant 3 : i32
    %49 = vector.broadcast %c3_i32 : i32 to vector<8x16x1xi32>
    %50 = arith.cmpi eq, %19, %49 : vector<8x16x1xi32>
    %cst_26 = arith.constant 1.000000e+02 : f32
    %cst_27 = arith.constant 0.000000e+00 : f32
    %51 = vector.broadcast %cst_26 : f32 to vector<8x16x1xf32>
    %52 = vector.broadcast %cst_27 : f32 to vector<8x16x1xf32>
    %53 = arith.select %50, %51, %52 : vector<8x16x1xi1>, vector<8x16x1xf32>
    %54 = vector.broadcast %53 : vector<8x16x1xf32> to vector<8x16x128xf32>
    %55 = arith.addf %18, %54 : vector<8x16x128xf32>
    %cst_28 = arith.constant dense<0xFF800000> : vector<8x128xf32>
    %56 = vector.multi_reduction <maximumf>, %55, %cst_28 [1] : vector<8x16x128xf32> to vector<8x128xf32>
    %57 = vector.broadcast %20 : vector<1x128xf32> to vector<8x128xf32>
    %58 = arith.addf %56, %57 : vector<8x128xf32>
    %cst_29 = arith.constant 1.000000e+02 : f32
    %59 = vector.broadcast %cst_29 : f32 to vector<8x128xf32>
    %60 = arith.subf %58, %59 : vector<8x128xf32>
    %cst_30 = arith.constant 0.000000e+00 : f32
    %61 = vector.broadcast %cst_30 : f32 to vector<8x128xf32>
    %62 = arith.maximumf %60, %61 : vector<8x128xf32>
    %63 = tpu.concatenate %34, %48, %62 in 1 : vector<8x128xf32>, vector<8x128xf32>, vector<8x128xf32> -> vector<8x384xf32>
    %c0_31 = arith.constant 0 : index
    %c0_32 = arith.constant 0 : index
    %64 = vector.load %arg5[%c0_31, %c0_32] : memref<8x384xf32, #tpu.memory_space<vmem>>, vector<8x384xf32>
    tpu.vector_store %arg5[%c0_31, %c0_32], %63 {strides = array<i32>} : memref<8x384xf32, #tpu.memory_space<vmem>>, vector<8x384xf32>,
    return
  }
  func.func @transform_0(%arg0: i32) -> (i32, i32, i32) {
    %c0_i32 = arith.constant 0 : i32
    %c0_i32_0 = arith.constant 0 : i32
    %c0_i32_1 = arith.constant 0 : i32
    return %arg0, %c0_i32, %c0_i32_0 : i32, i32, i32
  }
  func.func @transform_1(%arg0: i32) -> (i32, i32, i32) {
    %c0_i32 = arith.constant 0 : i32
    %c0_i32_0 = arith.constant 0 : i32
    %c0_i32_1 = arith.constant 0 : i32
    return %arg0, %c0_i32, %c0_i32_0 : i32, i32, i32
  }
  func.func @transform_2(%arg0: i32) -> (i32, i32, i32) {
    %c0_i32 = arith.constant 0 : i32
    %c0_i32_0 = arith.constant 0 : i32
    %c0_i32_1 = arith.constant 0 : i32
    %c0_i32_2 = arith.constant 0 : i32
    return %c0_i32, %c0_i32_0, %c0_i32_1 : i32, i32, i32
  }
  func.func @transform_3(%arg0: i32) -> (i32, i32) {
    %c0_i32 = arith.constant 0 : i32
    %c0_i32_0 = arith.constant 0 : i32
    %c0_i32_1 = arith.constant 0 : i32
    return %c0_i32, %c0_i32_0 : i32, i32
  }
  func.func @transform_4(%arg0: i32) -> (i32, i32) {
    %c0_i32 = arith.constant 0 : i32
    %c0_i32_0 = arith.constant 0 : i32
    return %arg0, %c0_i32 : i32, i32
  }
}

</mosaic_0001>

<bundles_post_ra>
// kernel: tpu_custom_call.1
= control target key start
LH: loop header
LB: loop body
LE: loop exit
PB: predicated region body
PF: predicated region fallthrough
CT: control target
= control target key end

     0   :  { %9 = vsyncpa [#allocation3], 0  ;;  %s3203_s0 = inlined_call_operand.vmem [shape: bf16[16,18,48], index: 0, kind: input, shape index: {}]   ;;  %s3204_s1 = inlined_call_operand.vmem [shape: s32[16,16,1], index: 1, kind: input, shape index: {}]   ;;  %s3205_s2 = inlined_call_operand.vmem [shape: bf16[3,48,128], index: 2, kind: input, shape index: {}]   ;;  %s3206_s3 = inlined_call_operand.vmem [shape: f32[1,128], index: 3, kind: input, shape index: {}]   ;;  %s3207_s4 = inlined_call_operand.hbm [shape: f32[16,384], index: 4, kind: output, shape index: {}]  }
   0x1   :  { %11 = vsyncpa [#allocation3 + $0x1], 0  ;;  %s2408_s15 = smov 0   ;;  %s2410_s16 = smov 0  }
   0x2   :  { %s2412_s17 = smov 0   ;;  %s2414_s18 = smov 0  }
   0x3 LB: > { %s2429_s19 = sadd.s32 4294967295, %s2378_s18   ;;  %s1867_s20 = sadd.s32 4294967294, %s2378_s18   ;;  %s2378_s18 = sphi %s2414_s18, %s3217_s18   ;;  %s2374_s17 = sphi %s2412_s17, %s3216_s17   ;;  %s2370_s16 = sphi %s2410_s16, %s3215_s16   ;;  %s2366_s15 = sphi %s2408_s15, %s3214_s15  }
   0x4   : > { %s2433_s21 = sadd.s32 1, %s2378_s18   ;;  %s118_s22 = sadd.s32 1, %s2374_s17 }
   0x5   : > { %s115_s23 = ssub.s32 %s2378_s18, %s2433_s21  ;;  %p128_p0 = scmp.ne.s32.totalorder %s2374_s17, %s2370_s16 }
   0x6   : > { %p116_p1 = scmp.eq.s32.totalorder %s115_s23, 0  ;;  %p129_p2 = scmp.eq.s32.totalorder %s2429_s19, 1 }
   0x7   : > { %p134_p3 = scmp.ne.s32.totalorder %s2370_s16, %s2366_s15  ;;  %p135_p4 = scmp.eq.s32.totalorder %s1867_s20, 1 }
   0x8   : > { %s2444_s24 = scalar_select %p116_p1, %s2374_s17, %s118_s22  }
   0x9   : > { %p2446_p5 = por %p129_p2, %p128_p0  ;;  %p2450_p6 = por %p135_p4, %p134_p3 }
   0xa   : > { %p1870_p7 = scmp.ge.s32.totalorder %s2378_s18, 1  ;;  %p179_p8 = scmp.lt.s32.totalorder %s2378_s18, 3 }
   0xc   : > { %p180_p9 = pnand %p1870_p7, %p179_p8 }
   0xd   : > { %s1871_s29 = sshll.u32 (!%p180_p9), %s2429_s19, 3  ;;  %s2089_s20 = smul.u32 (!%p180_p9), 384, %s2429_s19 }
   0xe   : > { %183 = sbr.rel (%p180_p9) target bundleno = 377 (0x179), region = 36  ;;  %p213_p10 = scmp.lt.s32.totalorder (!%p180_p9), %s1871_s29, 15 }
   0xf   : > { %s3159_s28 = scalar_lea.hbm (!%p180_p9), %s3207_s4, %s2089_s20  ;;  %s2382_s6 = smov (!%p180_p9), [#allocation2]  }
  0x10   : > { %s2322_s7 = sshll.u32 (!%p180_p9), %s2382_s6, 4  ;;  %s2323_s7 = int_to_ptr.vmem [resolvable:$false] %s2322_s7 }
  0x13   : > { %v2253_v0 = vld [vmem:[%s3205_s2 + $0x28] sm:$0xff]   ;;  %v2254_v1 = vld [vmem:[%s3205_s2 + $0x20] sm:$0xff]   ;;  %v2255_v2 = vld [vmem:[%s3205_s2 + $0x18] sm:$0xff]   ;;  %s3219_s29 = smov (!%p213_p10, %s1871_s29), 15  ;;  %vm257_vm0 = vsmask.f32 3328 }
  0x14   : > { %2081 = vmatprep.subr.bf16.mxu1 %v2253_v0  ;;  %2015 = vmatprep.subr.bf16.mxu0 %v2253_v0  ;;  %vm258_vm1 = vsmask.f32 7440  ;;  %s2088_s8 = smul.u32 12, %s3219_s29  ;;  %v2472_v3 = vld [vmem:[%s3205_s2 + $0x10] sm:$0xff]   ;;  %v2482_v4 = vld [vmem:[%s3205_s2 + $0x40] sm:$0xff]   ;;  %vm501_vm2 = vcmask 392192  }
  0x15   : > { %2084 = vmatpush3.bf16.msra.mxu1 %v2253_v0  ;;  %2016 = vmatpush3.bf16.msra.mxu0 %v2253_v0  ;;  %v2380_v13 = vmov 0   ;;  %vm2523_vm3 = vmor %vm257_vm0, %vm258_vm1  ;;  %vm810_vm4 = vcmask 1042432   ;;  %vm811_vm5 = vcmask 1046532  }
  0x16   : > { %2082 = vmatprep.subr.bf16.mxu1 %v2254_v1  ;;  %2017 = vmatprep.subr.bf16.mxu0 %v2254_v1  ;;  %s2477_s13 = scalar_lea.vmem %s3203_s0, %s2088_s8  ;;  %vm2654_vm6 = vmor %vm810_vm4, %vm811_vm5  ;;  %s1981_s8 = sshll.u32 %s3219_s29, 4 }
  0x17   : > { %v2485_v5 = vld [vmem:[%s2477_s13] sm:$0xf]  ;;  %v2488_v6 = vld [vmem:[%s2477_s13 + $0x4] sm:$0xf]  ;;  %v2491_v7 = vld [vmem:[%s2477_s13 + $0x8] sm:$0x1]  ;;  %2142 = vset.pattern.permute.xlu1 %v2380_v13  ;;  %2131 = vset.pattern.permute.xlu0 %v2380_v13  ;;  %s2673_s10 = scalar_lea.vmem %s3204_s1, %s1981_s8 }
  0x18   : > { %v261_v8 = vshrl.u32 %v2485_v5, 16  ;;  %v264_v9 = vshll.u32 %v2485_v5, 16  ;;  %v270_v10 = vshll.u32 %v2488_v6, 16  ;;  %v274_v11 = vshrl.u32 %v2488_v6, 16  ;;  %v2498_v12 = vld [vmem:[%s2477_s13 + $0x30] sm:$0xf] }
  0x19   : > { %2085 = vmatpush3.bf16.msra.mxu1 %v2254_v1  ;;  %2018 = vmatpush3.bf16.msra.mxu0 %v2254_v1  ;;  %v280_v14 = vshll.u32 %v2491_v7, 16  ;;  %v818_v15 = vrot.slane %v2491_v7, 5  ;;  %v2503_v16 = vld [vmem:[%s2477_s13 + $0x34] sm:$0xf]  ;;  %v2506_v17 = vld [vmem:[%s2477_s13 + $0x38] sm:$0x1]  ;;  %v1901_v36 = vcombine.low %v2485_v5, %v2488_v6 }
  0x1a   : > { %2083 = vmatprep.subr.bf16.mxu1 %v2255_v2  ;;  %2019 = vmatprep.subr.bf16.mxu0 %v2255_v2  ;;  %v263_v18 = vrot.slane %v261_v8, 4  ;;  %v266_v19 = vrot.slane %v264_v9, 5  ;;  %v272_v20 = vrot.slane %v270_v10, 5  ;;  %v276_v21 = vrot.slane %v274_v11, 4  ;;  %v2516_v30 = vld [vmem:[%s2477_s13 + $0xc] sm:$0xf] }
  0x1b   : > { %v282_v22 = vrot.slane %v280_v14, 5  ;;  %v357_v23 = vshrl.u32 %v2498_v12, 16  ;;  %v360_v24 = vshll.u32 %v2498_v12, 16  ;;  %v366_v25 = vshll.u32 %v2503_v16, 16  ;;  %v2519_v31 = vld [vmem:[%s2477_s13 + $0x10] sm:$0xf] }
  0x1c   : > { %v267_v26 = vor.u32 %v266_v19, %v263_v18  ;;  %v277_v27 = vor.u32 %v276_v21, %v272_v20  ;;  %v370_v28 = vshrl.u32 %v2503_v16, 16  ;;  %v376_v29 = vshll.u32 %v2506_v17, 16  ;;  %v2530_v42 = vld [vmem:[%s2477_s13 + $0x14] sm:$0x1]  ;;  %v2541_v54 = vld [vmem:[%s2477_s13 + $0x3c] sm:$0xf] }
  0x1d   : > { %2086 = vmatpush3.bf16.msra.mxu1 %v2255_v2  ;;  %2020 = vmatpush3.bf16.msra.mxu0 %v2255_v2  ;;  %v359_v33 = vrot.slane %v357_v23, 4  ;;  %v362_v34 = vrot.slane %v360_v24, 5  ;;  %v368_v35 = vrot.slane %v366_v25, 5  ;;  %v285_v43 = vshrl.u32 %v2516_v30, 16  ;;  %v2545_v59 = vld [vmem:[%s2477_s13 + $0x40] sm:$0xf] }
  0x1e   : > { %2037 = vmatprep.subr.bf16.mxu1 %v2472_v3  ;;  %2059 = vmatprep.subr.bf16.mxu0 %v2482_v4  ;;  %v268_v37 = vrot.slane %v267_v26, 4  ;;  %v278_v38 = vrot.slane %v277_v27, 4  ;;  %v372_v39 = vrot.slane %v370_v28, 4  ;;  %v378_v40 = vrot.slane %v376_v29, 5  ;;  %v2553_v0 = vld [vmem:[%s2477_s13 + $0x44] sm:$0x1] }
  0x1f   : > { %v363_v41 = vor.u32 %v362_v34, %v359_v33  ;;  %v288_v44 = vshll.u32 %v2516_v30, 16  ;;  %v294_v45 = vshll.u32 %v2519_v31, 16  ;;  %v298_v49 = vshrl.u32 %v2519_v31, 16  ;;  %v2559_v10 = vld [vmem:[%s2477_s13 + $0x18] sm:$0xf]  ;;  %v2701_v7 = vld [vmem:[%s2673_s10 + $0x28] sm:$0xff] }
  0x20   : > { %v273_v46 = vsel %vm2523_vm3, %v268_v37, %v272_v20  ;;  %v283_v47 = vsel %vm2523_vm3, %v278_v38, %v282_v22  ;;  %v373_v48 = vor.u32 %v372_v39, %v368_v35  ;;  %v287_v52 = vrot.slane %v285_v43, 4  ;;  %v2564_v19 = vld [vmem:[%s2477_s13 + $0x1c] sm:$0xf]  ;;  %v2569_v24 = vld [vmem:[%s2477_s13 + $0x20] sm:$0x1]  ;;  %s2324_s8 = scalar_lea.vmem %s2323_s7, 768 }
  0x21   : > { %v1882_v50 = vcombine.low %v273_v46, %v283_v47  ;;  %v364_v51 = vrot.slane %v363_v41, 4  ;;  %v290_v53 = vrot.slane %v288_v44, 5  ;;  %v296_v56 = vrot.slane %v294_v45, 5  ;;  %v2576_v29 = vld [vmem:[%s2477_s13 + $0x48] sm:$0xf]  ;;  %v2259_v39 = vld [vmem:[%s3205_s2 + $0x38] sm:$0xff]  }
  0x22   : > { %v374_v55 = vrot.slane %v373_v48, 4  ;;  %v300_v57 = vrot.slane %v298_v49, 4  ;;  %v304_v58 = vshll.u32 %v2530_v42, 16  ;;  %v846_v61 = vrot.slane %v2506_v17, 5  ;;  %v2582_v38 = vld [vmem:[%s2477_s13 + $0x4c] sm:$0xf] }
  0x23   : > { %2021 = vmatprep.mubr.msk.bf16.mxu0 %vm501_vm2, %v1882_v50  ;;  %v369_v60 = vsel %vm2523_vm3, %v364_v51, %v368_v35  ;;  %v291_v62 = vor.u32 %v290_v53, %v287_v52  ;;  %v822_v63 = vrot.slane %v2519_v31, 5  ;;  %v381_v9 = vshrl.u32 %v2541_v54, 16 }
  0x24   : > { %v379_v1 = vsel %vm2523_vm3, %v374_v55, %v378_v40  ;;  %v301_v2 = vor.u32 %v300_v57, %v296_v56  ;;  %v306_v8 = vrot.slane %v304_v58, 5  ;;  %v384_v14 = vshll.u32 %v2541_v54, 16  ;;  %v2595_v58 = vld [vmem:[%s2477_s13 + $0x50] sm:$0x1] }
  0x25   : > { %v1886_v11 = vcombine.low %v369_v60, %v379_v1  ;;  %v292_v13 = vrot.slane %v291_v62, 4  ;;  %v390_v18 = vshll.u32 %v2545_v59, 16  ;;  %v383_v21 = vrot.slane %v381_v9, 4 }
  0x26   : > { %v302_v20 = vrot.slane %v301_v2, 4  ;;  %v394_v22 = vshrl.u32 %v2545_v59, 16  ;;  %v400_v23 = vshll.u32 %v2553_v0, 16  ;;  %v386_v26 = vrot.slane %v384_v14, 5 }
  0x27   : > { %2029 = vmatprep.mubr.msk.bf16.mxu1 %vm501_vm2, %v1886_v11  ;;  %v297_v25 = vsel %vm2523_vm3, %v292_v13, %v296_v56  ;;  %v392_v27 = vrot.slane %v390_v18, 5  ;;  %v309_v28 = vshrl.u32 %v2559_v10, 16  ;;  %v312_v37 = vshll.u32 %v2559_v10, 16  ;;  %v2610_v18 = vld [vmem:[%s2477_s13 + $0x28] sm:$0xf] }
  0x28   : > { %v307_v33 = vsel %vm2523_vm3, %v302_v20, %v306_v8  ;;  %v396_v34 = vrot.slane %v394_v22, 4  ;;  %v402_v35 = vrot.slane %v400_v23, 5  ;;  %v387_v41 = vor.u32 %v386_v26, %v383_v21  ;;  %v2601_v8 = vld [vmem:[%s2477_s13 + $0x24] sm:$0xf]  ;;  %v2258_v21 = vld [vmem:[%s3205_s2 + $0x8] sm:$0xff]  }
  0x29   : > { %v1883_v40 = vcombine.low %v297_v25, %v307_v33  ;;  %v311_v43 = vrot.slane %v309_v28, 4  ;;  %v318_v44 = vshll.u32 %v2564_v19, 16  ;;  %v314_v46 = vrot.slane %v312_v37, 5  ;;  %v2619_v33 = vld [vmem:[%s2477_s13 + $0x2c] sm:$0x1] }
  0x2a   : > { %v397_v45 = vor.u32 %v396_v34, %v392_v27  ;;  %v322_v47 = vshrl.u32 %v2564_v19, 16  ;;  %v328_v48 = vshll.u32 %v2569_v24, 16  ;;  %v388_v49 = vrot.slane %v387_v41, 4 }
  0x2b   : > { %2022 = vmatmul.mubr.msk.bf16.vlgmr.msra.gmra.mxu0 %vm501_vm2, %v1883_v40  ;;  %v320_v50 = vrot.slane %v318_v44, 5  ;;  %v405_v51 = vshrl.u32 %v2576_v29, 16  ;;  %v408_v52 = vshll.u32 %v2576_v29, 16  ;;  %v315_v55 = vor.u32 %v314_v46, %v311_v43  ;;  %v2626_v43 = vld [vmem:[%s2477_s13 + $0x54] sm:$0xf] }
  0x2c   : > { %v398_v53 = vrot.slane %v397_v45, 4  ;;  %2060 = vmatpush3.bf16.msra.mxu0 %v2482_v4  ;;  %v324_v56 = vrot.slane %v322_v47, 4  ;;  %v330_v57 = vrot.slane %v328_v48, 5  ;;  %v393_v60 = vsel %vm2523_vm3, %v388_v49, %v392_v27  ;;  %v2261_v4 = vld [vmem:[%s3205_s2 + $0x30] sm:$0xff]   ;;  %v2633_v47 = vld [vmem:[%s2477_s13 + $0x58] sm:$0xf] }
  0x2d   : > { %v407_v62 = vrot.slane %v405_v51, 4  ;;  %v410_v1 = vrot.slane %v408_v52, 5  ;;  %v414_v2 = vshll.u32 %v2582_v38, 16  ;;  %2061 = vmatprep.subr.bf16.mxu0 %v2259_v39  ;;  %v316_v11 = vrot.slane %v315_v55, 4 }
  0x2e   : > { %v403_v9 = vsel %vm2523_vm3, %v398_v53, %v402_v35  ;;  %v325_v13 = vor.u32 %v324_v56, %v320_v50  ;;  %v418_v14 = vshrl.u32 %v2582_v38, 16  ;;  %v424_v25 = vshll.u32 %v2595_v58, 16 }
  0x2f   : > { %v1887_v20 = vcombine.low %v393_v60, %v403_v9  ;;  %v411_v22 = vor.u32 %v410_v1, %v407_v62  ;;  %v416_v23 = vrot.slane %v414_v2, 5  ;;  %v321_v26 = vsel %vm2523_vm3, %v316_v11, %v320_v50  ;;  %v2644_v60 = vld [vmem:[%s2477_s13 + $0x5c] sm:$0x1]  ;;  %s209_s13 = sand.u32 1, %s2370_s16  }
  0x30   : > { %v326_v27 = vrot.slane %v325_v13, 4  ;;  %v420_v28 = vrot.slane %v418_v14, 4  ;;  %v333_v34 = vshrl.u32 %v2601_v8, 16  ;;  %2062 = vmatpush3.bf16.msra.mxu0 %v2259_v39  ;;  %v426_v37 = vrot.slane %v424_v25, 5  ;;  %s3121_s14 = smul.u32 24, %s209_s13  ;;  %s1782_s30 = scalar_lea.sflag [#allocation3], %s209_s13 }
  0x31   : > { %2030 = vmatmul.mubr.msk.bf16.vlgmr.msra.gmra.mxu1 %vm501_vm2, %v1887_v20  ;;  %v412_v35 = vrot.slane %v411_v22, 4  ;;  %v336_v40 = vshll.u32 %v2601_v8, 16  ;;  %v342_v41 = vshll.u32 %v2610_v18, 16  ;;  %2063 = vmatprep.subr.bf16.mxu0 %v2261_v4  ;;  %v346_v39 = vshrl.u32 %v2610_v18, 16 }
  0x32   : > { %2038 = vmatpush3.bf16.msra.mxu1 %v2472_v3  ;;  %v331_v44 = vsel %vm2523_vm3, %v326_v27, %v330_v57  ;;  %v421_v45 = vor.u32 %v420_v28, %v416_v23  ;;  %v335_v46 = vrot.slane %v333_v34, 4  ;;  %v2260_v3 = vld [vmem:[%s3205_s2] sm:$0xff]   ;;  %v352_v55 = vshll.u32 %v2619_v33, 16  ;;  %s211_s22 = scalar_lea.vmem [#allocation2], %s3121_s14 }
  0x33   : > { %2039 = vmatprep.subr.bf16.mxu1 %v2258_v21  ;;  %v1884_v48 = vcombine.low %v321_v26, %v331_v44  ;;  %v417_v49 = vsel %vm2523_vm3, %v412_v35, %v416_v23  ;;  %v338_v50 = vrot.slane %v336_v40, 5  ;;  %v344_v51 = vrot.slane %v342_v41, 5  ;;  %s1796_s23 = sshll.u32 %s211_s22, 4  ;;  %s3161_s23 = int_to_ptr.vmem [resolvable:$true] %s1796_s23 }
  0x34   : > { %v422_v52 = vrot.slane %v421_v45, 4  ;;  %v348_v53 = vrot.slane %v346_v39, 4  ;;  %v429_v56 = vshrl.u32 %v2626_v43, 16  ;;  %2064 = vmatpush3.bf16.msra.mxu0 %v2261_v4  ;;  %v432_v62 = vshll.u32 %v2626_v43, 16  ;;  %s2318_s5 = scalar_lea.vmem %s3161_s23, 384  ;;  %p2325_p0 = scmp.lt.s32.totalorder %s3161_s23, %s2323_s7 }
  0x35   : > { %2025 = vmatprep.mubr.msk.bf16.mxu0 %vm501_vm2, %v1884_v48  ;;  %v339_v57 = vor.u32 %v338_v50, %v335_v46  ;;  %v438_v1 = vshll.u32 %v2633_v47, 16  ;;  %v442_v2 = vshrl.u32 %v2633_v47, 16  ;;  %v354_v13 = vrot.slane %v352_v55, 5  ;;  %p2319_p11 = scmp.ne.s32.totalorder %s3161_s23, %s2318_s5  ;;  %p2326_p1 = scmp.lt.s32.totalorder %s2324_s8, %s2318_s5 }
  0x36   : > { %2040 = vmatpush3.bf16.msra.mxu1 %v2258_v21  ;;  %v427_v9 = vsel %vm2523_vm3, %v422_v52, %v426_v37  ;;  %v349_v11 = vor.u32 %v348_v53, %v344_v51  ;;  %v431_v14 = vrot.slane %v429_v56, 4  ;;  %v434_v22 = vrot.slane %v432_v62, 5 }
  0x37   : > { %v1888_v4 = vcombine.low %v417_v49, %v427_v9  ;;  %v340_v20 = vrot.slane %v339_v57, 4  ;;  %v440_v23 = vrot.slane %v438_v1, 5  ;;  %2041 = vmatprep.subr.bf16.mxu1 %v2260_v3  ;;  %v444_v26 = vrot.slane %v442_v2, 4  ;;  %v2698_v9 = vld [vmem:[%s2673_s10 + $0x20] sm:$0xff]  ;;  %p2320_p12 = pnand %p2319_p11, %p2446_p5  ;;  %p2327_p2 = por %p2326_p1, %p2325_p0 }
  0x38   : > { %v350_v25 = vrot.slane %v349_v11, 4  ;;  %v448_v27 = vshll.u32 %v2644_v60, 16  ;;  %v1920_v21 = vrot.slane %v2485_v5, 9  ;;  %v825_v34 = vrot.slane %v2530_v42, 5 }
  0x39   : > { %2033 = vmatprep.mubr.msk.bf16.mxu1 %vm501_vm2, %v1888_v4  ;;  %v345_v35 = vsel %vm2523_vm3, %v340_v20, %v344_v51  ;;  %v435_v37 = vor.u32 %v434_v22, %v431_v14  ;;  %v815_v40 = vrot.slane %v2488_v6, 5  ;;  %v445_v44 = vor.u32 %v444_v26, %v440_v23  ;;  %v2712_v22 = vld [vmem:[%s2673_s10] sm:$0xff]  ;;  %p2321_p13 = pneg %p2320_p12 }
  0x3a   : > { %v355_v41 = vsel %vm2523_vm3, %v350_v25, %v354_v13  ;;  %v450_v45 = vrot.slane %v448_v27, 5  ;;  %2042 = vmatpush3.bf16.msra.mxu1 %v2260_v3  ;;  %v1921_v46 = vrot.slane %v2516_v30, 9  ;;  %v1902_v51 = vcombine.low %v2516_v30, %v2519_v31 }
  0x3b   : > { %v1885_v39 = vcombine.low %v345_v35, %v355_v41  ;;  %v436_v48 = vrot.slane %v435_v37, 4  ;;  %v816_v42 = vsel %vm2654_vm6, %v1920_v21, %v815_v40  ;;  %v817_v49 = vrot.slane %v815_v40, 4  ;;  %v2739_v37 = vld [vmem:[%s2673_s10 + $0x30] sm:$0xff]  ;;  %v2742_v40 = vld [vmem:[%s2673_s10 + $0x38] sm:$0xff]  ;;  %p2328_p3 = pnand %p2327_p2, %p2321_p13 }
  0x3c   : > { %v446_v50 = vrot.slane %v445_v44, 4  ;;  %v823_v3 = vsel %vm2654_vm6, %v1921_v46, %v822_v63  ;;  %v824_v52 = vrot.slane %v822_v63, 4  ;;  %v1922_v56 = vrot.slane %v2559_v10, 9 }
  0x3d   : > { %2026 = vmatmul.mubr.msk.bf16.gmra.mxu0 %vm501_vm2, %v1885_v39  ;;  %v441_v53 = vsel %vm2523_vm3, %v436_v48, %v440_v23  ;;  %v819_v55 = vsel %vm2654_vm6, %v817_v49, %v818_v15  ;;  %v829_v57 = vrot.slane %v2564_v19, 5  ;;  %v832_v2 = vrot.slane %v2569_v24, 5  ;;  %v2715_v23 = vld [vmem:[%s2673_s10 + $0x8] sm:$0xff] }
  0x3e   : > { %v451_v62 = vsel %vm2523_vm3, %v446_v50, %v450_v45  ;;  %v1934_v63 = vcombine.low %v816_v42, %v819_v55  ;;  %v826_v1 = vsel %vm2654_vm6, %v824_v52, %v825_v34  ;;  %v1903_v11 = vcombine.low %v2559_v10, %v2564_v19  ;;  %v2754_v50 = vld [vmem:[%s2673_s10 + $0x10] sm:$0xff] }
  0x3f   : > { %v1889_v15 = vcombine.low %v441_v53, %v451_v62  ;;  %v830_v32 = vsel %vm2654_vm6, %v1922_v56, %v829_v57  ;;  %v831_v13 = vrot.slane %v829_v57, 4  ;;  %v1935_v14 = vcombine.low %v823_v3, %v826_v1  ;;  %v2757_v3 = vld [vmem:[%s2673_s10 + $0x18] sm:$0xff]  ;;  %v2770_v62 = vld [vmem:[%s2673_s10 + $0x50] sm:$0xff] }
  0x40   : > { %2065 = vmatprep.mubr.msk.bf16.mxu0 %vm501_vm2, %v1934_v63  ;;  %v1923_v4 = vrot.slane %v2601_v8, 9  ;;  %v836_v20 = vrot.slane %v2610_v18, 5  ;;  %v839_v24 = vrot.slane %v2619_v33, 5  ;;  %vm1076_vm7 = vcmp.eq.s32.totalorder %v2698_v9, 1  ;;  %v2773_v63 = vld [vmem:[%s2673_s10 + $0x58] sm:$0xff] }
  0x41   : > { %2034 = vmatmul.mubr.msk.bf16.gmra.mxu1 %vm501_vm2, %v1889_v15  ;;  %v833_v10 = vsel %vm2654_vm6, %v831_v13, %v832_v2  ;;  %vm1077_vm8 = vcmp.eq.s32.totalorder %v2701_v7, 1  ;;  %v1904_v33 = vcombine.low %v2601_v8, %v2610_v18  ;;  %v2381_v26 = vmov 0.0   ;;  %v2786_v15 = vld [vmem:[%s2673_s10 + $0x40] sm:$0xff] }
  0x42   : > { %2043 = vmatprep.mubr.msk.bf16.mxu1 %vm501_vm2, %v1901_v36  ;;  %v1936_v19 = vcombine.low %v830_v32, %v833_v10  ;;  %v838_v25 = vrot.slane %v836_v20, 4  ;;  %v1092_v27 = vsel %vm1076_vm7, 100.0, %v2381_v26  ;;  %v837_v21 = vsel %vm2654_vm6, %v1923_v4, %v836_v20  ;;  %v2789_v32 = vld [vmem:[%s2673_s10 + $0x48] sm:$0xff] }
  0x43   : > { %v1093_v34 = vsel %vm1077_vm8, 100.0, %v2381_v26  ;;  %vm1072_vm9 = vcmp.eq.s32.totalorder %v2712_v22, 1  ;;  %vm1073_vm10 = vcmp.eq.s32.totalorder %v2715_v23, 1  ;;  %v1905_v44 = vcombine.low %v2498_v12, %v2503_v16 }
  0x44   : > { %v840_v5 = vsel %vm2654_vm6, %v838_v25, %v839_v24  ;;  %v2143_v6 = vpack.i.bf16 %v1093_v34, %v1092_v27  ;;  %v1088_v36 = vsel %vm1072_vm9, 100.0, %v2381_v26  ;;  %v1089_v35 = vsel %vm1073_vm10, 100.0, %v2381_v26  ;;  %v2812_v25 = vld [vmem:[%s2673_s10 + $0x78] sm:$0xff] }
  0x45   : > { %2066 = vmatmul.mubr.msk.bf16.vlgmr.msra.gmra.mxu0 %vm501_vm2, %v1935_v14  ;;  %v2132_v41 = vpack.i.bf16 %v1089_v35, %v1088_v36  ;;  %v1924_v45 = vrot.slane %v2498_v12, 9  ;;  %v843_v46 = vrot.slane %v2503_v16, 5  ;;  %v1937_v39 = vcombine.low %v837_v21, %v840_v5 }
  0x46   : > { %2069 = vmatprep.mubr.msk.bf16.mxu0 %vm501_vm2, %v1936_v19  ;;  %2144 = vperm.xlu1 %2142, %v2143_v6   ;;  %v1925_v48 = vrot.slane %v2541_v54, 9  ;;  %v850_v42 = vrot.slane %v2545_v59, 5  ;;  %v853_v49 = vrot.slane %v2553_v0, 5  ;;  %vm1078_vm11 = vcmp.eq.s32.totalorder %v2739_v37, 1  ;;  %v2809_v19 = vld [vmem:[%s2673_s10 + $0x70] sm:$0xff] }
  0x47   : > { %2133 = vperm.xlu0 %2131, %v2132_v41   ;;  %v844_v52 = vsel %vm2654_vm6, %v1924_v45, %v843_v46  ;;  %v845_v53 = vrot.slane %v843_v46, 4  ;;  %vm1079_vm12 = vcmp.eq.s32.totalorder %v2742_v40, 1  ;;  %v1094_v56 = vsel %vm1078_vm11, 100.0, %v2381_v26  ;;  %v2824_v45 = vld [vmem:[%s2673_s10 + $0x60] sm:$0xff]  ;;  %v2827_v46 = vld [vmem:[%s2673_s10 + $0x68] sm:$0xff] }
  0x48   : > { %v2765_v55 = vsel %vm2654_vm6, %v1925_v48, %v850_v42  ;;  %v852_v0 = vrot.slane %v850_v42, 4  ;;  %v1095_v57 = vsel %vm1079_vm12, 100.0, %v2381_v26  ;;  %vm1074_vm13 = vcmp.eq.s32.totalorder %v2754_v50, 1 }
  0x49   : > { %2044 = vmatmul.mubr.msk.bf16.vlgmr.msra.gmra.mxu1 %vm501_vm2, %v1902_v51  ;;  %v847_v1 = vsel %vm2654_vm6, %v845_v53, %v846_v61  ;;  %v2148_v2 = vpack.i.bf16 %v1095_v57, %v1094_v56  ;;  %vm1075_vm14 = vcmp.eq.s32.totalorder %v2757_v3, 1  ;;  %v1090_v17 = vsel %vm1074_vm13, 100.0, %v2381_v26 }
  0x4a   : > { %2047 = vmatprep.mubr.msk.bf16.mxu1 %vm501_vm2, %v1903_v11  ;;  %v1938_v13 = vcombine.low %v844_v52, %v847_v1  ;;  %v854_v30 = vsel %vm2654_vm6, %v852_v0, %v853_v49  ;;  %v1091_v31 = vsel %vm1075_vm14, 100.0, %v2381_v26  ;;  %v1906_v61 = vcombine.low %v2541_v54, %v2545_v59 }
  0x4b   : > { %2149 = vperm.xlu1 %2142, %v2148_v2   ;;  %v2137_v51 = vpack.i.bf16 %v1091_v31, %v1090_v17  ;;  %vm1082_vm15 = vcmp.eq.s32.totalorder %v2770_v62, 1  ;;  %vm1083_vm0 = vcmp.eq.s32.totalorder %v2773_v63, 1  ;;  %vm1080_vm1 = vcmp.eq.s32.totalorder %v2786_v15, 1 }
  0x4c   : > { %v1098_v11 = vsel %vm1082_vm15, 100.0, %v2381_v26  ;;  %v1099_v14 = vsel %vm1083_vm0, 100.0, %v2381_v26  ;;  %vm1081_vm3 = vcmp.eq.s32.totalorder %v2789_v32, 1  ;;  %v1939_v4 = vcombine.low %v2765_v55, %v854_v30 }
  0x4d   : > { %2070 = vmatmul.mubr.msk.bf16.gmra.mxu0 %vm501_vm2, %v1937_v39  ;;  %2138 = vperm.xlu0 %2131, %v2137_v51   ;;  %v2158_v20 = vpack.i.bf16 %v1099_v14, %v1098_v11  ;;  %v1096_v24 = vsel %vm1080_vm1, 100.0, %v2381_v26  ;;  %v1097_v10 = vsel %vm1081_vm3, 100.0, %v2381_v26  ;;  %v1926_v21 = vrot.slane %v2576_v29, 9 }
  0x4e   : > { %2073 = vmatprep.mubr.msk.bf16.mxu0 %vm501_vm2, %v1938_v13  ;;  %v2153_v27 = vpack.i.bf16 %v1097_v10, %v1096_v24  ;;  %v857_v34 = vrot.slane %v2582_v38, 5  ;;  %v860_v5 = vrot.slane %v2595_v58, 5  ;;  %v1907_v6 = vcombine.low %v2576_v29, %v2582_v38 }
  0x4f   : > { %2159 = vperm.xlu1 %2142, %v2158_v20   ;;  %v1927_v36 = vrot.slane %v2626_v43, 9  ;;  %v864_v35 = vrot.slane %v2633_v47, 5  ;;  %v867_v41 = vrot.slane %v2644_v60, 5  ;;  %vm1086_vm4 = vcmp.eq.s32.totalorder %v2809_v19, 1 }
  0x50   : > { %v858_v39 = vsel %vm2654_vm6, %v1926_v21, %v857_v34  ;;  %v859_v48 = vrot.slane %v857_v34, 4  ;;  %vm1087_vm5 = vcmp.eq.s32.totalorder %v2812_v25, 1  ;;  %v1102_v58 = vsel %vm1086_vm4, 100.0, %v2381_v26 }
  0x51   : > { %2048 = vmatmul.mubr.msk.bf16.gmra.mxu1 %vm501_vm2, %v1904_v33  ;;  %2154 = vperm.xlu0 %2131, %v2153_v27   ;;  %v865_v29 = vsel %vm2654_vm6, %v1927_v36, %v864_v35  ;;  %v866_v38 = vrot.slane %v864_v35, 4  ;;  %v1103_v60 = vsel %vm1087_vm5, 100.0, %v2381_v26  ;;  %vm1084_vm7 = vcmp.eq.s32.totalorder %v2824_v45, 1 }
  0x52   : > { %2051 = vmatprep.mubr.msk.bf16.mxu1 %vm501_vm2, %v1905_v44  ;;  %v861_v42 = vsel %vm2654_vm6, %v859_v48, %v860_v5  ;;  %v2168_v8 = vpack.i.bf16 %v1103_v60, %v1102_v58  ;;  %vm1085_vm8 = vcmp.eq.s32.totalorder %v2827_v46, 1  ;;  %v1100_v49 = vsel %vm1084_vm7, 100.0, %v2381_v26 }
  0x53   : > { %v1940_v18 = vcombine.low %v858_v39, %v861_v42  ;;  %v868_v33 = vsel %vm2654_vm6, %v866_v38, %v867_v41  ;;  %v1101_v52 = vsel %vm1085_vm8, 100.0, %v2381_v26  ;;  %vm1288_vm9 = vcmp.eq.s32.totalorder %v2754_v50, 2 }
  0x54   : > { %v1941_v53 = vcombine.low %v865_v29, %v868_v33  ;;  %2169 = vperm.xlu1 %2142, %v2168_v8   ;;  %v2163_v12 = vpack.i.bf16 %v1101_v52, %v1100_v49  ;;  %vm1289_vm10 = vcmp.eq.s32.totalorder %v2757_v3, 2  ;;  %v1304_v16 = vsel %vm1288_vm9, 100.0, %v2381_v26 }
  0x55   : > { %2074 = vmatmul.mubr.msk.bf16.gmra.mxu0 %vm501_vm2, %v1939_v4  ;;  %v1305_v44 = vsel %vm1289_vm10, 100.0, %v2381_v26  ;;  %vm1286_vm11 = vcmp.eq.s32.totalorder %v2712_v22, 2  ;;  %vm1287_vm6 = vcmp.eq.s32.totalorder %v2715_v23, 2  ;;  %vm1292_vm12 = vcmp.eq.s32.totalorder %v2739_v37, 2 }
  0x56   : > { %2077 = vmatprep.mubr.msk.bf16.mxu0 %vm501_vm2, %v1940_v18  ;;  %2164 = vperm.xlu0 %2131, %v2163_v12   ;;  %v2178_v28 = vpack.i.bf16 %v1305_v44, %v1304_v16  ;;  %v1302_v55 = vsel %vm1286_vm11, 100.0, %v2381_v26  ;;  %v1303_v0 = vsel %vm1287_vm6, 100.0, %v2381_v26  ;;  %vm1293_vm13 = vcmp.eq.s32.totalorder %v2742_v40, 2 }
  0x57   : > { %v2173_v56 = vpack.i.bf16 %v1303_v0, %v1302_v55  ;;  %v1308_v57 = vsel %vm1292_vm12, 100.0, %v2381_v26  ;;  %vm1290_vm14 = vcmp.eq.s32.totalorder %v2698_v9, 2  ;;  %v1309_v1 = vsel %vm1293_vm13, 100.0, %v2381_v26 }
  0x58   : > { %2179 = vperm.xlu1 %2142, %v2178_v28   ;;  %vm1291_vm15 = vcmp.eq.s32.totalorder %v2701_v7, 2  ;;  %v1306_v2 = vsel %vm1290_vm14, 100.0, %v2381_v26  ;;  %vm1497_vm0 = vcmp.eq.s32.totalorder %v2757_v3, 3  ;;  %v2188_v13 = vpack.i.bf16 %v1309_v1, %v1308_v57 }
  0x59   : > { %2052 = vmatmul.mubr.msk.bf16.gmra.mxu1 %vm501_vm2, %v1906_v61  ;;  %v1307_v30 = vsel %vm1291_vm15, 100.0, %v2381_v26  ;;  %vm1498_vm1 = vcmp.eq.s32.totalorder %v2698_v9, 3  ;;  %v1513_v17 = vsel %vm1497_vm0, 100.0, %v2381_v26  ;;  %vm1294_vm3 = vcmp.eq.s32.totalorder %v2786_v15, 2 }
  0x5a   : > { %2055 = vmatprep.mubr.msk.bf16.mxu1 %vm501_vm2, %v1907_v6  ;;  %2174 = vperm.xlu0 %2131, %v2173_v56   ;;  %v2183_v31 = vpack.i.bf16 %v1307_v30, %v1306_v2  ;;  %v1514_v51 = vsel %vm1498_vm1, 100.0, %v2381_v26  ;;  %vm1496_vm4 = vcmp.eq.s32.totalorder %v2754_v50, 3  ;;  %v1310_v54 = vsel %vm1294_vm3, 100.0, %v2381_v26 }
  0x5b   : > { %v1512_v59 = vsel %vm1496_vm4, 100.0, %v2381_v26  ;;  %vm1495_vm5 = vcmp.eq.s32.totalorder %v2715_v23, 3  ;;  %v2198_v9 = vpack.i.bf16 %v1514_v51, %v1513_v17  ;;  %vm1500_vm7 = vcmp.eq.s32.totalorder %v2739_v37, 3 }
  0x5c   : > { %2189 = vperm.xlu1 %2142, %v2188_v13   ;;  %vm1494_vm8 = vcmp.eq.s32.totalorder %v2712_v22, 3  ;;  %v1908_v3 = vcombine.low %v2626_v43, %v2633_v47  ;;  %v1511_v61 = vsel %vm1495_vm5, 100.0, %v2381_v26  ;;  %v1516_v50 = vsel %vm1500_vm7, 100.0, %v2381_v26 }
  0x5d   : > { %2078 = vmatmul.mubr.msk.bf16.gmra.mxu0 %vm501_vm2, %v1941_v53  ;;  %vm1499_vm9 = vcmp.eq.s32.totalorder %v2701_v7, 3  ;;  %v2193_v11 = vpack.i.bf16 %v1512_v59, %v1310_v54  ;;  %vm1502_vm10 = vcmp.eq.s32.totalorder %v2786_v15, 3  ;;  %vm1503_vm11 = vcmp.eq.s32.totalorder %v2789_v32, 3 }
  0x5e   : > { %2184 = vperm.xlu0 %2131, %v2183_v31   ;;  %v1510_v23 = vsel %vm1494_vm8, 100.0, %v2381_v26  ;;  %v1515_v22 = vsel %vm1499_vm9, 100.0, %v2381_v26  ;;  %v2208_v43 = vpack.i.bf16 %v1516_v50, %v1511_v61  ;;  %vm1295_vm6 = vcmp.eq.s32.totalorder %v2789_v32, 2 }
  0x5f   : > { %vm1501_vm12 = vcmp.eq.s32.totalorder %v2742_v40, 3  ;;  %v1518_v47 = vsel %vm1502_vm10, 100.0, %v2381_v26  ;;  %v1519_v7 = vsel %vm1503_vm11, 100.0, %v2381_v26  ;;  %v2203_v37 = vpack.i.bf16 %v1510_v23, %v1515_v22 }
  0x60   : > { %2199 = vperm.xlu1 %2142, %v2198_v9   ;;  %vm1504_vm13 = vcmp.eq.s32.totalorder %v2770_v62, 3  ;;  %vm1505_vm14 = vcmp.eq.s32.totalorder %v2773_v63, 3  ;;  %v1311_v15 = vsel %vm1295_vm6, 100.0, %v2381_v26  ;;  %v1517_v14 = vsel %vm1501_vm12, 100.0, %v2381_v26 }
  0x61   : > { %2056 = vmatmul.mubr.msk.bf16.gmra.mxu1 %vm501_vm2, %v1908_v3  ;;  %v2218_v32 = vpack.i.bf16 %v1519_v7, %v1518_v47  ;;  %vm1296_vm15 = vcmp.eq.s32.totalorder %v2770_v62, 2  ;;  %vm1297_vm2 = vcmp.eq.s32.totalorder %v2773_v63, 2  ;;  %v1520_v40 = vsel %vm1504_vm13, 100.0, %v2381_v26 }
  0x62   : > { %2194 = vperm.xlu0 %2131, %v2193_v11   ;;  %v1521_v4 = vsel %vm1505_vm14, 100.0, %v2381_v26  ;;  %v2213_v20 = vpack.i.bf16 %v1311_v15, %v1517_v14  ;;  %vm1506_vm0 = vcmp.eq.s32.totalorder %v2824_v45, 3  ;;  %vm1507_vm1 = vcmp.eq.s32.totalorder %v2827_v46, 3 }
  0x63   : > { %v1312_v24 = vsel %vm1296_vm15, 100.0, %v2381_v26  ;;  %v1313_v10 = vsel %vm1297_vm2, 100.0, %v2381_v26  ;;  %v2228_v27 = vpack.i.bf16 %v1521_v4, %v1520_v40  ;;  %vm1298_vm3 = vcmp.eq.s32.totalorder %v2824_v45, 2 }
  0x64   : > { %2209 = vperm.xlu1 %2142, %v2208_v43   ;;  %vm1299_vm4 = vcmp.eq.s32.totalorder %v2827_v46, 2  ;;  %v1522_v62 = vsel %vm1506_vm0, 100.0, %v2381_v26  ;;  %v1523_v63 = vsel %vm1507_vm1, 100.0, %v2381_v26  ;;  %v2223_v21 = vpack.i.bf16 %v1313_v10, %v1312_v24 }
  0x65   : > { %vm1508_vm5 = vcmp.eq.s32.totalorder %v2809_v19, 3  ;;  %vm1509_vm7 = vcmp.eq.s32.totalorder %v2812_v25, 3  ;;  %v1314_v34 = vsel %vm1298_vm3, 100.0, %v2381_v26  ;;  %v1315_v5 = vsel %vm1299_vm4, 100.0, %v2381_v26 }
  0x66   : > { %2204 = vperm.xlu0 %2131, %v2203_v37   ;;  %v2238_v6 = vpack.i.bf16 %v1523_v63, %v1522_v62  ;;  %vm1300_vm8 = vcmp.eq.s32.totalorder %v2809_v19, 2  ;;  %vm1301_vm9 = vcmp.eq.s32.totalorder %v2812_v25, 2  ;;  %v1524_v36 = vsel %vm1508_vm5, 100.0, %v2381_v26 }
  0x67   : > { %v1525_v35 = vsel %vm1509_vm7, 100.0, %v2381_v26  ;;  %v2233_v41 = vpack.i.bf16 %v1315_v5, %v1314_v34  ;;  %v1316_v45 = vsel %vm1300_vm8, 100.0, %v2381_v26  ;;  %v1317_v46 = vsel %vm1301_vm9, 100.0, %v2381_v26 }
  0x68   : > { %2219 = vperm.xlu1 %2142, %v2218_v32   ;;  %v2248_v39 = vpack.i.bf16 %v1525_v35, %v1524_v36  ;;  %v2243_v48 = vpack.i.bf16 %v1317_v46, %v1316_v45  ;;  %vm1711_vm10 = vcmask 1041409   ;;  %vm1714_vm11 = vcmask 1042434  }
  0x69   : > { %vm1717_vm6 = vcmask 1043459   ;;  %vm1720_vm12 = vcmask 1044484   ;;  %vm1723_vm13 = vcmask 1045509   ;;  %vm1726_vm14 = vcmask 1046534  }
  0x6a   : > { %2214 = vperm.xlu0 %2131, %v2213_v20   ;;  %vm1729_vm15 = vcmask 1047559  }
  0x6c   : > { %2229 = vperm.xlu1 %2142, %v2228_v27  }
  0x6e   : > { %2224 = vperm.xlu0 %2131, %v2223_v21  }
  0x70   : > { %2239 = vperm.xlu1 %2142, %v2238_v6  }
  0x72   : > { %2234 = vperm.xlu0 %2131, %v2233_v41  }
  0x74   : > { %2249 = vperm.xlu1 %2142, %v2248_v39  }
  0x76   : > { %2244 = vperm.xlu0 %2131, %v2243_v48  }
  0xc1   : > { %v2928_v29 = vpop.permute.xlu1 %2144 }
  0xc2   : > { %v2930_v19 = vpop.permute.xlu0 %2133 }
  0xc6   : > { %v2932_v25 = vpop.permute.xlu1 %2149 }
  0xc8   : > { %v2934_v38 = vpop.permute.xlu0 %2138 }
  0xca   : > { %v2936_v58 = vpop.permute.xlu1 %2159 }
  0xcc   : > { %v2938_v60 = vpop.permute.xlu0 %2154 }
  0xcf   : > { %v2940_v42 = vpop.permute.xlu1 %2169 }
  0xd1   : > { %v2942_v26 = vpop.permute.xlu0 %2164 }
  0xd3   : > { %v2180_v18 = vpop.permute.xlu1 %2179 }
  0xd5   : > { %v2175_v52 = vpop.permute.xlu0 %2174 }
  0xd7   : > { %v2948_v16 = vpop.permute.xlu1 %2189 }
  0xd9   : > { %v2950_v44 = vpop.permute.xlu0 %2184 }
  0xdb   : > { %v2954_v0 = vpop.permute.xlu1 %2199 }
  0xdd   : > { %v2958_v1 = vpop.permute.xlu0 %2194 }
  0xdf   : > { %v2966_v17 = vpop.permute.xlu1 %2209 }
  0xe1   : > { %v2972_v54 = vpop.permute.xlu0 %2204 }
  0xe3   : > { %v2978_v61 = vpop.permute.xlu1 %2219 }
  0xe5   : > { %v2980_v23 = vpop.permute.xlu0 %2214 }
  0xe7   : > { %v2982_v32 = vpop.permute.xlu1 %2229 }
  0xe9   : > { %v2984_v20 = vpop.permute.xlu0 %2224 }
  0xeb   : > { %v2023_v8 = vpop.f32.mrf.mxu0 }
  0xed   : > { %v560_v49 = vpop.f32.mrf.mxu0 }
  0xef   : > { %v2024_v12 = vpop.f32.mrf.mxu0 }
  0xf1   : > { %v2944_v33 = vpop.f32.mrf.mxu1  ;;  %v563_v55 = vpop.f32.mrf.mxu0 }
  0xf3   : > { %v2946_v53 = vpop.f32.mrf.mxu1 }
  0xf5   : > { %v2952_v28 = vpop.f32.mrf.mxu1 }
  0xf7   : > { %v2956_v56 = vpop.f32.mrf.mxu1 }
  0xfd   : > { %v2027_v57 = vpop.f32.mrf.mxu0 }
  0xff   : > { %v2960_v2 = vpop.f32.mrf.mxu0 }
 0x101   : > { %v2962_v13 = vpop.f32.mrf.mxu1  ;;  %v2964_v30 = vpop.f32.mrf.mxu0 }
 0x103   : > { %v2968_v31 = vpop.f32.mrf.mxu1  ;;  %v2970_v51 = vpop.f32.mrf.mxu0 }
 0x105   : > { %v2974_v59 = vpop.f32.mrf.mxu1  ;;  %v2067_v9 = vpop.f32.mrf.mxu0 }
 0x107   : > { %v2976_v3 = vpop.f32.mrf.mxu1  ;;  %v976_v11 = vpop.f32.mrf.mxu0 }
 0x109   : > { %v2045_v50 = vpop.f32.mrf.mxu1  ;;  %v2068_v15 = vpop.f32.mrf.mxu0 }
 0x10a   : > { %v748_v22 = vadd.f32 %v2045_v50, %v2023_v8 }
 0x10b   : > { %v739_v43 = vpop.f32.mrf.mxu1  ;;  %v979_v62 = vpop.f32.mrf.mxu0 }
 0x10c   : > { %v740_v47 = vadd.f32 %v739_v43, %v560_v49  ;;  %v1041_v7 = vadd.f32 %v2067_v9, %v748_v22  ;;  %v2994_v22 = vpop.permute.xlu1 %2239 }
 0x10d   : > { %v2046_v37 = vpop.f32.mrf.mxu1 }
 0x10e   : > { %v1039_v14 = vadd.f32 %v976_v11, %v740_v47  ;;  %v751_v40 = vadd.f32 %v2046_v37, %v2024_v12  ;;  %v2270_v10 = vadd.low.f32.bf16 %v1041_v7, %v2934_v38  ;;  %v2271_v21 = vadd.low.f32.bf16 %v1041_v7, %v2180_v18  ;;  %v2071_v11 = vpop.f32.mrf.mxu0 }
 0x10f   : > { %v742_v4 = vpop.f32.mrf.mxu1  ;;  %v2272_v34 = vadd.high.f32.bf16 %v1041_v7, %v2958_v1 }
 0x110   : > { %v743_v24 = vadd.f32 %v742_v4, %v563_v55  ;;  %v1042_v27 = vadd.f32 %v2068_v15, %v751_v40  ;;  %v2273_v5 = vadd.low.f32.bf16 %v1039_v14, %v2930_v19  ;;  %v2274_v36 = vadd.low.f32.bf16 %v1039_v14, %v2175_v52 }
 0x111   : > { %v2049_v63 = vpop.f32.mrf.mxu1  ;;  %v2278_v39 = vadd.high.f32.bf16 %v1039_v14, %v2972_v54 }
 0x112   : > { %v1040_v6 = vadd.f32 %v979_v62, %v743_v24  ;;  %v2275_v35 = vadd.high.f32.bf16 %v1042_v27, %v2934_v38  ;;  %v2276_v41 = vadd.high.f32.bf16 %v1042_v27, %v2180_v18  ;;  %v2277_v45 = vadd.low.f32.bf16 %v1042_v27, %v2954_v0  ;;  %v992_v27 = vpop.f32.mrf.mxu0 }
 0x113   : > { %v755_v46 = vpop.f32.mrf.mxu1  ;;  %v764_v50 = vadd.f32 %v2049_v63, %v2027_v57  ;;  %v2998_v57 = vpop.permute.xlu0 %2234 }
 0x114   : > { %v2279_v48 = vadd.high.f32.bf16 %v1040_v6, %v2930_v19  ;;  %v2280_v8 = vadd.high.f32.bf16 %v1040_v6, %v2175_v52  ;;  %v2281_v49 = vadd.low.f32.bf16 %v1040_v6, %v2966_v17  ;;  %v1207_v12 = vmax.f32 %v2270_v10, %v2275_v35 }
 0x115   : > { %v1421_v55 = vmax.f32 %v2271_v21, %v2276_v41  ;;  %v1629_v9 = vmax.f32 %v2272_v34, %v2277_v45  ;;  %v2050_v15 = vpop.f32.mrf.mxu1  ;;  %v2996_v10 = vadd.f32 %v2071_v11, %v764_v50 }
 0x116   : > { %v1200_v43 = vmax.f32 %v2273_v5, %v2279_v48  ;;  %v1414_v38 = vmax.f32 %v2274_v36, %v2280_v8  ;;  %v1622_v18 = vmax.f32 %v2278_v39, %v2281_v49  ;;  %v1208_v47 = vrot.slane %v1207_v12, 4 }
 0x117   : > { %v1422_v7 = vrot.slane %v1421_v55, 4  ;;  %v1630_v37 = vrot.slane %v1629_v9, 4  ;;  %v767_v34 = vadd.f32 %v2050_v15, %v2964_v30  ;;  %v756_v39 = vadd.f32 %v755_v46, %v2960_v2  ;;  %v3009_v2 = vld [vmem:[%s3206_s3] ss:$0 sm:$0xff] }
 0x118   : > { %v1201_v14 = vrot.slane %v1200_v43, 4  ;;  %v1415_v40 = vrot.slane %v1414_v38, 4  ;;  %v1623_v19 = vrot.slane %v1622_v18, 4  ;;  %v1209_v52 = vmax.f32 %v1207_v12, %v1208_v47 }
 0x119   : > { %v1423_v4 = vmax.f32 %v1421_v55, %v1422_v7  ;;  %v1631_v24 = vmax.f32 %v1629_v9, %v1630_v37  ;;  %v2282_v12 = vadd.low.f32.bf16 %v2996_v10, %v2932_v25  ;;  %v2072_v55 = vpop.f32.mrf.mxu0  ;;  %v2283_v47 = vadd.low.f32.bf16 %v2996_v10, %v2948_v16 }
 0x11a   : > { %v1202_v62 = vmax.f32 %v1200_v43, %v1201_v14  ;;  %v1416_v63 = vmax.f32 %v1414_v38, %v1415_v40  ;;  %v1624_v21 = vmax.f32 %v1622_v18, %v1623_v19  ;;  %v1210_v5 = vrot.slane %v1209_v52, 2  ;;  %v3012_v14 = vpop.permute.xlu1 %2249 }
 0x11b   : > { %v1424_v6 = vrot.slane %v1423_v4, 2  ;;  %v1632_v36 = vrot.slane %v1631_v24, 2  ;;  %v1046_v43 = vadd.f32 %v2072_v55, %v767_v34 }
 0x11c   : > { %v1203_v35 = vrot.slane %v1202_v62, 2  ;;  %v1417_v41 = vrot.slane %v1416_v63, 2  ;;  %v1625_v45 = vrot.slane %v1624_v21, 2  ;;  %v1211_v48 = vmax.f32 %v1209_v52, %v1210_v5 }
 0x11d   : > { %v1425_v8 = vmax.f32 %v1423_v4, %v1424_v6  ;;  %v1633_v49 = vmax.f32 %v1631_v24, %v1632_v36  ;;  %v2284_v15 = vadd.high.f32.bf16 %v1046_v43, %v2932_v25  ;;  %v2285_v4 = vadd.high.f32.bf16 %v1046_v43, %v2948_v16  ;;  %v3015_v24 = vpop.permute.xlu0 %2244 }
 0x11e   : > { %v1204_v9 = vmax.f32 %v1202_v62, %v1203_v35  ;;  %v1418_v50 = vmax.f32 %v1416_v63, %v1417_v41  ;;  %v1626_v11 = vmax.f32 %v1624_v21, %v1625_v45  ;;  %v1212_v30 = vrot.slane %v1211_v48, 1  ;;  %v758_v35 = vpop.f32.mrf.mxu1 }
 0x11f   : > { %v1426_v38 = vrot.slane %v1425_v8, 1  ;;  %v1634_v18 = vrot.slane %v1633_v49, 1  ;;  %v1221_v21 = vmax.f32 %v2282_v12, %v2284_v15  ;;  %v1435_v36 = vmax.f32 %v2283_v47, %v2285_v4 }
 0x120   : > { %v1205_v46 = vrot.slane %v1204_v9, 1  ;;  %v1419_v7 = vrot.slane %v1418_v50, 1  ;;  %v1627_v37 = vrot.slane %v1626_v11, 1  ;;  %v1213_v40 = vmax.f32 %v1211_v48, %v1212_v30 }
 0x121   : > { %v1427_v19 = vmax.f32 %v1425_v8, %v1426_v38  ;;  %v1635_v52 = vmax.f32 %v1633_v49, %v1634_v18  ;;  %v1043_v25 = vadd.f32 %v992_v27, %v756_v39  ;;  %v1222_v41 = vrot.slane %v1221_v21, 4  ;;  %v2053_v18 = vpop.f32.mrf.mxu1 }
 0x122   : > { %v1206_v62 = vmax.f32 %v1204_v9, %v1205_v46  ;;  %v1420_v63 = vmax.f32 %v1418_v50, %v1419_v7  ;;  %v1263_v34 = vadd.f32 %v3009_v2, %v1213_v40  ;;  %v1628_v6 = vmax.f32 %v1626_v11, %v1627_v37  ;;  %v995_v37 = vpop.f32.mrf.mxu0 }
 0x123   : > { %v1471_v5 = vadd.f32 %v3009_v2, %v1427_v19  ;;  %v1679_v45 = vadd.f32 %v3009_v2, %v1635_v52  ;;  %v1436_v8 = vrot.slane %v1435_v36, 4  ;;  %v1223_v49 = vmax.f32 %v1221_v21, %v1222_v41 }
 0x124   : > { %v1262_v48 = vadd.f32 %v3009_v2, %v1206_v62  ;;  %v1470_v16 = vadd.f32 %v3009_v2, %v1420_v63  ;;  %v759_v55 = vadd.f32 %v758_v35, %v2970_v51  ;;  %v1955_v12 = vadd.f32 -100.0, %v1263_v34 }
 0x125   : > { %v1963_v9 = vadd.f32 -100.0, %v1471_v5  ;;  %v1678_v50 = vadd.f32 %v3009_v2, %v1628_v6  ;;  %v1437_v30 = vmax.f32 %v1435_v36, %v1436_v8  ;;  %v2286_v27 = vadd.high.f32.bf16 %v2996_v10, %v2966_v17  ;;  %v771_v6 = vpop.f32.mrf.mxu1 }
 0x126   : > { %v2287_v39 = vadd.low.f32.bf16 %v1043_v25, %v2928_v29  ;;  %v2288_v11 = vadd.low.f32.bf16 %v1043_v25, %v2950_v44  ;;  %v1224_v38 = vrot.slane %v1223_v49, 2  ;;  %v1971_v47 = vadd.f32 -100.0, %v1679_v45 }
 0x127   : > { %v1954_v46 = vadd.f32 -100.0, %v1262_v48  ;;  %v2289_v7 = vadd.high.f32.bf16 %v1043_v25, %v2954_v0  ;;  %v1438_v51 = vrot.slane %v1437_v30, 2  ;;  %v1962_v15 = vadd.f32 -100.0, %v1470_v16 }
 0x128   : > { %v1225_v40 = vmax.f32 %v1223_v49, %v1224_v38  ;;  %v2290_v19 = vadd.low.f32.bf16 %v1046_v43, %v2980_v23  ;;  %v1044_v52 = vadd.f32 %v995_v37, %v759_v55  ;;  %v1279_v4 = vmax.f32 %v1955_v12, 0.0  ;;  %v2075_v43 = vpop.f32.mrf.mxu0 }
 0x129   : > { %v1487_v62 = vmax.f32 %v1963_v9, 0.0  ;;  %v3030_v17 = vadd.f32 -100.0, %v1678_v50  ;;  %v1439_v10 = vmax.f32 %v1437_v30, %v1438_v51  ;;  %v1695_v0 = vmax.f32 %v1971_v47, 0.0  ;;  %v2054_v30 = vpop.f32.mrf.mxu1 }
 0x12a   : > { %v1226_v63 = vrot.slane %v1225_v40, 1  ;;  %v1643_v21 = vmax.f32 %v2286_v27, %v2290_v19  ;;  %v2291_v34 = vadd.high.f32.bf16 %v1044_v52, %v2928_v29  ;;  %v2292_v5 = vadd.high.f32.bf16 %v1044_v52, %v2950_v44 }
 0x12b   : > { %v1278_v36 = vmax.f32 %v1954_v46, 0.0  ;;  %v2293_v35 = vadd.low.f32.bf16 %v1044_v52, %v2972_v54  ;;  %v780_v25 = vadd.f32 %v2053_v18, %v2944_v33  ;;  %v1440_v41 = vrot.slane %v1439_v10, 1  ;;  %v1008_v33 = vpop.f32.mrf.mxu0 }
 0x12c   : > { %v1644_v45 = vrot.slane %v1643_v21, 4  ;;  %v1214_v48 = vmax.f32 %v2287_v39, %v2291_v34  ;;  %v1428_v8 = vmax.f32 %v2288_v11, %v2292_v5  ;;  %v1710_v16 = vrot.slane %v1279_v4, 7 }
 0x12d   : > { %v1740_v49 = vrot.slane %v1487_v62, 7  ;;  %v1486_v55 = vmax.f32 %v1962_v15, 0.0  ;;  %v1636_v12 = vmax.f32 %v2289_v7, %v2293_v35  ;;  %v1227_v9 = vmax.f32 %v1225_v40, %v1226_v63  ;;  %v774_v62 = vpop.f32.mrf.mxu1  ;;  %v2076_v34 = vpop.f32.mrf.mxu0 }
 0x12e   : > { %v1645_v29 = vmax.f32 %v1643_v21, %v1644_v45  ;;  %v1215_v50 = vrot.slane %v1214_v48, 4  ;;  %v1429_v44 = vrot.slane %v1428_v8, 4  ;;  %v1763_v27 = vrot.slane %v1695_v0, 7 }
 0x12f   : > { %v1694_v38 = vmax.f32 %v3030_v17, 0.0  ;;  %v1637_v54 = vrot.slane %v1636_v12, 4  ;;  %v1049_v47 = vadd.f32 %v2075_v43, %v780_v25  ;;  %v1441_v18 = vmax.f32 %v1439_v10, %v1440_v41 }
 0x130   : > { %v1646_v46 = vrot.slane %v1645_v29, 2  ;;  %v1216_v51 = vmax.f32 %v1214_v48, %v1215_v50  ;;  %v1430_v39 = vmax.f32 %v1428_v8, %v1429_v44  ;;  %v3038_v11 = vsel %vm1711_vm10, %v1710_v16, %v1278_v36 }
 0x131   : > { %v3041_v7 = vsel %vm1711_vm10, %v1740_v49, %v1486_v55  ;;  %v1638_v37 = vmax.f32 %v1636_v12, %v1637_v54  ;;  %v772_v15 = vadd.f32 %v771_v6, %v2946_v53  ;;  %v1265_v40 = vadd.f32 %v3009_v2, %v1227_v9  ;;  %v1011_v12 = vpop.f32.mrf.mxu0 }
 0x132   : > { %v1647_v19 = vmax.f32 %v1645_v29, %v1646_v46  ;;  %v1217_v52 = vrot.slane %v1216_v51, 2  ;;  %v1431_v4 = vrot.slane %v1430_v39, 2  ;;  %v2294_v10 = vadd.low.f32.bf16 %v1049_v47, %v2936_v58 }
 0x133   : > { %v1639_v17 = vrot.slane %v1638_v37, 2  ;;  %v2295_v63 = vadd.low.f32.bf16 %v1049_v47, %v2984_v20  ;;  %v783_v21 = vadd.f32 %v2054_v30, %v2952_v28  ;;  %v1473_v5 = vadd.f32 %v3009_v2, %v1441_v18 }
 0x134   : > { %v1648_v0 = vrot.slane %v1647_v19, 1  ;;  %v1218_v36 = vmax.f32 %v1216_v51, %v1217_v52  ;;  %v1432_v35 = vmax.f32 %v1430_v39, %v1431_v4  ;;  %v2296_v6 = vadd.low.f32.bf16 %v1049_v47, %v2982_v32 }
 0x135   : > { %v1640_v53 = vmax.f32 %v1638_v37, %v1639_v17  ;;  %v1050_v25 = vadd.f32 %v2076_v34, %v783_v21  ;;  %v775_v43 = vadd.f32 %v774_v62, %v2956_v56  ;;  %v1957_v41 = vadd.f32 -100.0, %v1265_v40  ;;  %v2057_v62 = vpop.f32.mrf.mxu1 }
 0x136   : > { %v1219_v45 = vrot.slane %v1218_v36, 1  ;;  %v1433_v48 = vrot.slane %v1432_v35, 1  ;;  %v1047_v8 = vadd.f32 %v1008_v33, %v772_v15  ;;  %v3055_v9 = vsel %vm1711_vm10, %v1763_v27, %v1694_v38 }
 0x137   : > { %v1641_v16 = vrot.slane %v1640_v53, 1  ;;  %v2297_v49 = vadd.high.f32.bf16 %v1050_v25, %v2936_v58  ;;  %v2298_v28 = vadd.high.f32.bf16 %v1050_v25, %v2984_v20  ;;  %v2299_v55 = vadd.high.f32.bf16 %v1050_v25, %v2982_v32 }
 0x138   : > { %v3057_v29 = vadd.f32 -100.0, %v1473_v5  ;;  %v1649_v50 = vmax.f32 %v1647_v19, %v1648_v0  ;;  %v1048_v44 = vadd.f32 %v1011_v12, %v775_v43  ;;  %v1220_v56 = vmax.f32 %v1218_v36, %v1219_v45  ;;  %v787_v45 = vpop.f32.mrf.mxu1 }
 0x139   : > { %v1235_v30 = vmax.f32 %v2294_v10, %v2297_v49  ;;  %v1449_v54 = vmax.f32 %v2295_v63, %v2298_v28  ;;  %v1657_v47 = vmax.f32 %v2296_v6, %v2299_v55  ;;  %v1281_v33 = vmax.f32 %v1957_v41, 0.0  ;;  %v2079_v28 = vpop.f32.mrf.mxu0 }
 0x13a   : > { %v1434_v18 = vmax.f32 %v1432_v35, %v1433_v48  ;;  %v2300_v58 = vadd.low.f32.bf16 %v1047_v8, %v2938_v60  ;;  %v2301_v20 = vadd.high.f32.bf16 %v1048_v44, %v2938_v60  ;;  %v1642_v46 = vmax.f32 %v1640_v53, %v1641_v16 }
 0x13b   : > { %v1236_v32 = vrot.slane %v1235_v30, 4  ;;  %v1450_v51 = vrot.slane %v1449_v54, 4  ;;  %v1658_v39 = vrot.slane %v1657_v47, 4  ;;  %v1489_v27 = vmax.f32 %v3057_v29, 0.0 }
 0x13c   : > { %v1681_v38 = vadd.f32 %v3009_v2, %v1649_v50  ;;  %v2302_v37 = vadd.low.f32.bf16 %v1047_v8, %v2958_v1  ;;  %v1228_v15 = vmax.f32 %v2300_v58, %v2301_v20  ;;  %v1264_v40 = vadd.f32 %v3009_v2, %v1220_v56  ;;  %v2058_v58 = vpop.f32.mrf.mxu1 }
 0x13d   : > { %v1237_v19 = vmax.f32 %v1235_v30, %v1236_v32  ;;  %v1451_v52 = vmax.f32 %v1449_v54, %v1450_v51  ;;  %v1659_v4 = vmax.f32 %v1657_v47, %v1658_v39  ;;  %v3065_v17 = vrot.slane %v1281_v33, 5 }
 0x13e   : > { %v1472_v60 = vadd.f32 %v3009_v2, %v1434_v18  ;;  %v2303_v10 = vadd.low.f32.bf16 %v1047_v8, %v2978_v61  ;;  %v1229_v63 = vrot.slane %v1228_v15, 4  ;;  %v1680_v21 = vadd.f32 %v3009_v2, %v1642_v46 }
 0x13f   : > { %v1238_v34 = vrot.slane %v1237_v19, 2  ;;  %v1452_v5 = vrot.slane %v1451_v52, 2  ;;  %v1660_v0 = vrot.slane %v1659_v4, 2  ;;  %v1973_v1 = vadd.f32 -100.0, %v1681_v38 }
 0x140   : > { %v1230_v36 = vmax.f32 %v1228_v15, %v1229_v63  ;;  %v2304_v35 = vadd.high.f32.bf16 %v1048_v44, %v2980_v23  ;;  %v796_v53 = vadd.f32 %v2057_v62, %v2962_v13  ;;  %v1956_v6 = vadd.f32 -100.0, %v1264_v40 }
 0x141   : > { %v1239_v25 = vmax.f32 %v1237_v19, %v1238_v34  ;;  %v1453_v43 = vmax.f32 %v1451_v52, %v1452_v5  ;;  %v1661_v41 = vmax.f32 %v1659_v4, %v1660_v0  ;;  %v1964_v48 = vadd.f32 -100.0, %v1472_v60  ;;  %v790_v0 = vpop.f32.mrf.mxu1 }
 0x142   : > { %v1231_v16 = vrot.slane %v1230_v36, 2  ;;  %v1442_v8 = vmax.f32 %v2302_v37, %v2304_v35  ;;  %v2305_v49 = vadd.high.f32.bf16 %v1048_v44, %v2978_v61  ;;  %v1972_v55 = vadd.f32 -100.0, %v1680_v21  ;;  %v1024_v61 = vpop.f32.mrf.mxu0 }
 0x143   : > { %v1240_v12 = vrot.slane %v1239_v25, 1  ;;  %v1454_v29 = vrot.slane %v1453_v43, 1  ;;  %v1662_v50 = vrot.slane %v1661_v41, 1  ;;  %v1697_v56 = vmax.f32 %v1973_v1, 0.0 }
 0x144   : > { %v1232_v30 = vmax.f32 %v1230_v36, %v1231_v16  ;;  %v1443_v23 = vrot.slane %v1442_v8, 4  ;;  %v1650_v54 = vmax.f32 %v2303_v10, %v2305_v49  ;;  %v1280_v13 = vmax.f32 %v1956_v6, 0.0  ;;  %v2080_v5 = vpop.f32.mrf.mxu0 }
 0x145   : > { %v1241_v47 = vmax.f32 %v1239_v25, %v1240_v12  ;;  %v1455_v33 = vmax.f32 %v1453_v43, %v1454_v29  ;;  %v1663_v18 = vmax.f32 %v1661_v41, %v1662_v50  ;;  %v788_v51 = vadd.f32 %v787_v45, %v2968_v31 }
 0x146   : > { %v1233_v20 = vrot.slane %v1232_v30, 1  ;;  %v1444_v46 = vmax.f32 %v1442_v8, %v1443_v23  ;;  %v1651_v32 = vrot.slane %v1650_v54, 4  ;;  %v1488_v44 = vmax.f32 %v1964_v48, 0.0 }
 0x147   : > { %v1696_v39 = vmax.f32 %v1972_v55, 0.0  ;;  %v1267_v38 = vadd.f32 %v3009_v2, %v1241_v47  ;;  %v1053_v37 = vadd.f32 %v2079_v28, %v796_v53  ;;  %v1475_v15 = vadd.f32 %v3009_v2, %v1455_v33  ;;  %v1027_v55 = vpop.f32.mrf.mxu0 }
 0x148   : > { %v1445_v40 = vrot.slane %v1444_v46, 2  ;;  %v1652_v19 = vmax.f32 %v1650_v54, %v1651_v32  ;;  %v799_v52 = vadd.f32 %v2058_v58, %v2974_v59  ;;  %v3077_v4 = vrot.slane %v1489_v27, 5 }
 0x149   : > { %v3079_v62 = vrot.slane %v1697_v56, 5  ;;  %v3081_v60 = vrot.slane %v1280_v13, 6  ;;  %v1683_v31 = vadd.f32 %v3009_v2, %v1663_v18  ;;  %v1234_v10 = vmax.f32 %v1232_v30, %v1233_v20 }
 0x14a   : > { %v1446_v63 = vmax.f32 %v1444_v46, %v1445_v40  ;;  %v1653_v21 = vrot.slane %v1652_v19, 2  ;;  %v1051_v34 = vadd.f32 %v1024_v61, %v788_v51  ;;  %v3084_v1 = vrot.slane %v1488_v44, 6 }
 0x14b   : > { %v3086_v36 = vrot.slane %v1696_v39, 6  ;;  %v1959_v35 = vadd.f32 -100.0, %v1267_v38  ;;  %v2306_v59 = vadd.low.f32.bf16 %v1053_v37, %v2940_v42  ;;  %v3089_v27 = vadd.f32 -100.0, %v1475_v15 }
 0x14c   : > { %v1447_v53 = vrot.slane %v1446_v63, 1  ;;  %v1654_v6 = vmax.f32 %v1652_v19, %v1653_v21  ;;  %v1054_v25 = vadd.f32 %v2080_v5, %v799_v52  ;;  %v3091_v43 = vadd.f32 -100.0, %v1683_v31 }
 0x14d   : > { %v2307_v41 = vadd.low.f32.bf16 %v1053_v37, %v3015_v24  ;;  %v2308_v45 = vadd.low.f32.bf16 %v1053_v37, %v3012_v14  ;;  %v791_v48 = vadd.f32 %v790_v0, %v2976_v3  ;;  %v1266_v16 = vadd.f32 %v3009_v2, %v1234_v10 }
 0x14e   : > { %v1655_v8 = vrot.slane %v1654_v6, 1  ;;  %v2309_v49 = vadd.low.f32.bf16 %v1051_v34, %v2942_v26  ;;  %v2310_v28 = vadd.high.f32.bf16 %v1054_v25, %v2940_v42  ;;  %v2311_v12 = vadd.low.f32.bf16 %v1051_v34, %v2998_v57 }
 0x14f   : > { %v2312_v29 = vadd.high.f32.bf16 %v1054_v25, %v3015_v24  ;;  %v2313_v50 = vadd.high.f32.bf16 %v1054_v25, %v3012_v14  ;;  %v1052_v56 = vadd.f32 %v1027_v55, %v791_v48  ;;  %v1283_v30 = vmax.f32 %v1959_v35, 0.0 }
 0x150   : > { %v1491_v23 = vmax.f32 %v3089_v27, 0.0  ;;  %v1448_v54 = vmax.f32 %v1446_v63, %v1447_v53  ;;  %v1249_v3 = vmax.f32 %v2306_v59, %v2310_v28  ;;  %v1656_v42 = vmax.f32 %v1654_v6, %v1655_v8 }
 0x151   : > { %v1463_v13 = vmax.f32 %v2307_v41, %v2312_v29  ;;  %v1671_v47 = vmax.f32 %v2308_v45, %v2313_v50  ;;  %v2314_v33 = vadd.high.f32.bf16 %v1052_v56, %v2942_v26  ;;  %v2315_v18 = vadd.high.f32.bf16 %v1052_v56, %v2998_v57 }
 0x152   : > { %v2316_v58 = vadd.low.f32.bf16 %v1051_v34, %v2994_v22  ;;  %v1250_v20 = vrot.slane %v1249_v3, 4  ;;  %v2317_v24 = vadd.high.f32.bf16 %v1052_v56, %v2994_v22  ;;  %v1699_v61 = vmax.f32 %v3091_v43, 0.0 }
 0x153   : > { %v1464_v14 = vrot.slane %v1463_v13, 4  ;;  %v1672_v46 = vrot.slane %v1671_v47, 4  ;;  %v1242_v32 = vmax.f32 %v2309_v49, %v2314_v33  ;;  %v1456_v51 = vmax.f32 %v2311_v12, %v2315_v18 }
 0x154   : > { %v1474_v44 = vadd.f32 %v3009_v2, %v1448_v54  ;;  %v1251_v39 = vmax.f32 %v1249_v3, %v1250_v20  ;;  %v1664_v38 = vmax.f32 %v2316_v58, %v2317_v24  ;;  %v1958_v40 = vadd.f32 -100.0, %v1266_v16 }
 0x155   : > { %v1465_v26 = vmax.f32 %v1463_v13, %v1464_v14  ;;  %v1673_v37 = vmax.f32 %v1671_v47, %v1672_v46  ;;  %v1243_v57 = vrot.slane %v1242_v32, 4  ;;  %v1457_v15 = vrot.slane %v1456_v51, 4 }
 0x156   : > { %v1682_v19 = vadd.f32 %v3009_v2, %v1656_v42  ;;  %v1252_v52 = vrot.slane %v1251_v39, 2  ;;  %v1665_v31 = vrot.slane %v1664_v38, 4  ;;  %v3110_v34 = vrot.slane %v1283_v30, 3 }
 0x157   : > { %v1466_v22 = vrot.slane %v1465_v26, 2  ;;  %v1674_v10 = vrot.slane %v1673_v37, 2  ;;  %v1244_v63 = vmax.f32 %v1242_v32, %v1243_v57  ;;  %v1458_v21 = vmax.f32 %v1456_v51, %v1457_v15 }
 0x158   : > { %v1966_v5 = vadd.f32 -100.0, %v1474_v44  ;;  %v1253_v0 = vmax.f32 %v1251_v39, %v1252_v52  ;;  %v1666_v35 = vmax.f32 %v1664_v38, %v1665_v31  ;;  %v1282_v41 = vmax.f32 %v1958_v40, 0.0 }
 0x159   : > { %v1467_v59 = vmax.f32 %v1465_v26, %v1466_v22  ;;  %v1675_v53 = vmax.f32 %v1673_v37, %v1674_v10  ;;  %v1245_v6 = vrot.slane %v1244_v63, 2  ;;  %v1459_v25 = vrot.slane %v1458_v21, 2 }
 0x15a   : > { %v1974_v45 = vadd.f32 -100.0, %v1682_v19  ;;  %v1254_v48 = vrot.slane %v1253_v0, 1  ;;  %v1667_v16 = vrot.slane %v1666_v35, 2  ;;  %v1490_v12 = vmax.f32 %v1966_v5, 0.0 }
 0x15b   : > { %v1468_v8 = vrot.slane %v1467_v59, 1  ;;  %v1676_v49 = vrot.slane %v1675_v53, 1  ;;  %v1246_v28 = vmax.f32 %v1244_v63, %v1245_v6  ;;  %v1460_v55 = vmax.f32 %v1458_v21, %v1459_v25 }
 0x15c   : > { %v1255_v29 = vmax.f32 %v1253_v0, %v1254_v48  ;;  %v1668_v50 = vmax.f32 %v1666_v35, %v1667_v16  ;;  %v1715_v56 = vsel %vm1714_vm11, %v3081_v60, %v3038_v11  ;;  %v1698_v47 = vmax.f32 %v1974_v45, 0.0 }
 0x15d   : > { %v1469_v30 = vmax.f32 %v1467_v59, %v1468_v8  ;;  %v1677_v54 = vmax.f32 %v1675_v53, %v1676_v49  ;;  %v1247_v3 = vrot.slane %v1246_v28, 1  ;;  %v1461_v13 = vrot.slane %v1460_v55, 1 }
 0x15e   : > { %v1719_v33 = vrot.slane %v1282_v41, 4  ;;  %v1269_v18 = vadd.f32 %v3009_v2, %v1255_v29  ;;  %v1669_v42 = vrot.slane %v1668_v50, 1  ;;  %v1746_v11 = vrot.slane %v1490_v12, 4 }
 0x15f   : > { %v1477_v58 = vadd.f32 %v3009_v2, %v1469_v30  ;;  %v1685_v20 = vadd.f32 %v3009_v2, %v1677_v54  ;;  %v1248_v24 = vmax.f32 %v1246_v28, %v1247_v3  ;;  %v1462_v14 = vmax.f32 %v1460_v55, %v1461_v13 }
 0x160   : > { %v1670_v60 = vmax.f32 %v1668_v50, %v1669_v42  ;;  %v1961_v46 = vadd.f32 -100.0, %v1269_v18  ;;  %v1743_v32 = vsel %vm1714_vm11, %v3084_v1, %v3041_v7  ;;  %v1769_v26 = vrot.slane %v1698_v47, 4 }
 0x161   : > { %v1268_v51 = vadd.f32 %v3009_v2, %v1248_v24  ;;  %v1476_v44 = vadd.f32 %v3009_v2, %v1462_v14  ;;  %v1969_v39 = vadd.f32 -100.0, %v1477_v58  ;;  %v1977_v38 = vadd.f32 -100.0, %v1685_v20 }
 0x162   : > { %v1684_v37 = vadd.f32 %v3009_v2, %v1670_v60  ;;  %v1718_v57 = vsel %vm1717_vm6, %v3065_v17, %v1715_v56  ;;  %v1766_v15 = vsel %vm1714_vm11, %v3086_v36, %v3055_v9  ;;  %v1745_v1 = vsel %vm1717_vm6, %v3077_v4, %v1743_v32 }
 0x163   : > { %v1960_v40 = vadd.f32 -100.0, %v1268_v51  ;;  %v1968_v19 = vadd.f32 -100.0, %v1476_v44  ;;  %v1721_v7 = vsel %vm1720_vm12, %v1719_v33, %v1718_v57  ;;  %v1285_v31 = vmax.f32 %v1961_v46, 0.0 }
 0x164   : > { %v1976_v52 = vadd.f32 -100.0, %v1684_v37  ;;  %v1493_v22 = vmax.f32 %v1969_v39, 0.0  ;;  %v1747_v2 = vsel %vm1720_vm12, %v1746_v11, %v1745_v1  ;;  %v1701_v63 = vmax.f32 %v1977_v38, 0.0 }
 0x165   : > { %v1284_v10 = vmax.f32 %v1960_v40, 0.0  ;;  %v1492_v17 = vmax.f32 %v1968_v19, 0.0  ;;  %v1768_v9 = vsel %vm1717_vm6, %v3079_v62, %v1766_v15  ;;  %v1748_v36 = vrot.slane %v1491_v23, 3 }
 0x166   : > { %v1700_v21 = vmax.f32 %v1976_v52, 0.0  ;;  %v1770_v5 = vsel %vm1720_vm12, %v1769_v26, %v1768_v9  ;;  %v1771_v4 = vrot.slane %v1699_v61, 3  ;;  %v1724_v0 = vsel %vm1723_vm13, %v3110_v34, %v1721_v7 }
 0x167   : > { %v1725_v35 = vrot.slane %v1284_v10, 2  ;;  %v1750_v59 = vrot.slane %v1492_v17, 2  ;;  %v1728_v53 = vrot.slane %v1285_v31, 1  ;;  %v1749_v62 = vsel %vm1723_vm13, %v1748_v36, %v1747_v2 }
 0x168   : > { %v1752_v27 = vrot.slane %v1493_v22, 1  ;;  %v1773_v23 = vrot.slane %v1700_v21, 2  ;;  %v1772_v43 = vsel %vm1723_vm13, %v1771_v4, %v1770_v5  ;;  %v1775_v61 = vrot.slane %v1701_v63, 1 }
 0x169   : > { %v1727_v6 = vsel %vm1726_vm14, %v1725_v35, %v1724_v0  ;;  %v1751_v25 = vsel %vm1726_vm14, %v1750_v59, %v1749_v62 }
 0x16a   : > { %v1730_v34 = vsel %vm1729_vm15, %v1728_v53, %v1727_v6  ;;  %v1753_v41 = vsel %vm1729_vm15, %v1752_v27, %v1751_v25  ;;  %v1774_v45 = vsel %vm1726_vm14, %v1773_v23, %v1772_v43 }
 0x16b   : > { %v1776_v48 = vsel %vm1729_vm15, %v1775_v61, %v1774_v45  ;;  %1778 = vst [vmem:[%s211_s22] sm:$0xff] %v1730_v34  ;;  %1779 = vst [vmem:[%s211_s22 + $0x8] sm:$0xff] %v1753_v41 }
 0x16c   : > { %1780 = vst [vmem:[%s211_s22 + $0x10] sm:$0xff] %v1776_v48 }
 0x16d   : > { %2331 = shalt.err (!%p2328_p3)
}
 0x16e   : > { %s2332_s29 = scalar_lea.hbm %s3159_s28, 384  ;;  %s2336_s11 = scalar_lea.hbm %s3207_s4, 768 }
 0x16f   : > { %p2333_p4 = scmp.ne.s32.totalorder %s3159_s28, %s2332_s29  ;;  %p2337_p9 = scmp.lt.s32.totalorder %s3159_s28, %s3207_s4 }
 0x170   : > { %p2338_p10 = scmp.lt.s32.totalorder %s2336_s11, %s2332_s29 }
 0x171   : > { %p2334_p7 = pnand %p2333_p4, %p2446_p5 }
 0x172   : > { %p2339_p11 = por %p2338_p10, %p2337_p9 }
 0x173   : > { %p2335_p8 = pneg %p2334_p7 }
 0x175   : > { %p2340_p12 = pnand %p2339_p11, %p2335_p8 }
 0x177   : > { %2343 = shalt.err (!%p2340_p12)
}
 0x178   : > { %2090 = dma.vmem_to_hbm [thread:$0]  (%p2446_p5), %s3161_s23, 384, %s3159_s28, %s1782_s30  }
 0x179 PF: > { %p2096_p13 = scmp.ge.s32.totalorder %s2378_s18, 2  ;;  %s1808_s14 = sand.u32 1, %s2366_s15  }
 0x17a   : > { %s1809_s20 = scalar_lea.sflag [#allocation3], %s1808_s14 }
 0x17b   : > { %p2093_p0 = pnand %p2096_p13, %p2450_p6 }
 0x17d   : > { %p2094_p1 = pneg %p2093_p0 }
 0x17f   : > { %2361 = dma.done.wait (%p2094_p1), %s1809_s20, 384  }
 0x180   : > { %2363 = vsyncadd (%p2094_p1), %s1809_s20, 4294966912  ;;  %p14_p2 = scmp.ge.s32.totalorder %s2433_s21, 4   ;;  %s3214_s15 = smov %s2370_s16 }
 0x181   : > { %s3215_s16 = smov %s2374_s17  ;;  %s3216_s17 = smov %s2444_s24 }
 0x182   : > { %s3217_s18 = smov %s2433_s21  ;;  %16 = sbr.rel (!%p14_p2) target bundleno = 3 (0x3), region = 76 }
 0x187   :  { %1814 = vsyncpa [#allocation3], 1 }
 0x188   :  { %1816 = vsyncpa [#allocation3 + $0x1], 1 }

</bundles_post_ra>
